<compile_context>
chip_gen: v5e
topology: v5e:2x2
jax: 0.10.0
libtpu: 0.0.40
codegen_flags: <defaults>
</compile_context>

<pallas_src>
import jax
import jax.numpy as jnp
from jax.experimental import pallas as pl
from jax.experimental.pallas import tpu as pltpu  # noqa: F401  (TPU backend)

# ----------------------------- model config ---------------------------------
B = 2                # batch
N_SITES = 7          # number of sites
SEQ = N_SITES + 1    # cls token + sites
D = 32               # embed_dim
N_HEADS = 4
HEAD_DIM = D // N_HEADS
FE = 2               # forward_expansion
HID = D * FE
DEPTH = 2
N_CLS = 3            # > 2 -> head outputs N_CLS logits
SITE_DIM = 2
LANES = 128          # lane width of the packed parameter slab / padded output
EPS = 1e-6           # final nn.LayerNorm eps
# TODO(synk): `Block` source not provided; its internal LayerNorms may use the
# PyTorch default eps=1e-5 instead of 1e-6 (small systematic numeric drift).


# ------------------------- parameter slab layout -----------------------------
def _build_layout():
    """All parameters live in one lane-dense (rows, 128) f32 slab.

    Every entry starts on an 8-row (sublane-tile) boundary so the in-kernel
    static slices stay tile aligned.  Returns ({name: (row, nrows, ncols)},
    total_rows).
    """
    layout = {}
    row = 0

    def add(name, nrows, ncols):
        nonlocal row
        layout[name] = (row, nrows, ncols)
        row += ((nrows + 7) // 8) * 8

    add('tok_emb', N_CLS + 1, D)     # rows 0..N_CLS-1: nn.Embedding, row N_CLS: cls_token
    add('pos_fc1_w', SITE_DIM, HID)
    add('pos_fc1_b', 1, HID)
    add('pos_fc2_w', HID, D)
    add('pos_fc2_b', 1, D)
    for l in range(DEPTH):
        add(f'ln1_w_{l}', 1, D)
        add(f'ln1_b_{l}', 1, D)
        add(f'wqkv_{l}', D, 3 * D)   # lanes: [q | k | v], each block head-major
        add(f'bqkv_{l}', 1, 3 * D)
        add(f'wproj_{l}', D, D)      # rows are concat-of-heads order
        add(f'bproj_{l}', 1, D)
        add(f'ln2_w_{l}', 1, D)
        add(f'ln2_b_{l}', 1, D)
        add(f'fc1_w_{l}', D, HID)
        add(f'fc1_b_{l}', 1, HID)
        add(f'fc2_w_{l}', HID, D)
        add(f'fc2_b_{l}', 1, D)
    add('norm_w', 1, D)
    add('norm_b', 1, D)
    add('head_w', D, LANES)          # only the first N_CLS lanes are non-zero
    add('head_b', 1, LANES)
    return layout, row


LAYOUT, SLAB_ROWS = _build_layout()


# --------------------------- Pallas kernel -----------------------------------
def _layernorm(x, w, b):
    mu = jnp.mean(x, axis=-1, keepdims=True)
    var = jnp.mean((x - mu) ** 2, axis=-1, keepdims=True)
    return (x - mu) * jax.lax.rsqrt(var + EPS) * w + b


def fused_transformer_kernel(tok_idx_ref, pos_ref, slab_ref, out_ref):
    """Whole eval forward: embeddings + pos-MLP + DEPTH blocks + norm + head.

    tok_idx_ref: (B, S, 1) int32; value N_CLS marks the cls-token slot.
    pos_ref:     (B, S, SITE_DIM) f32 coordinates (trg first, then sites).
    slab_ref:    (SLAB_ROWS, 128) f32 packed parameters (see LAYOUT).
    out_ref:     (B, 128) f32; logits live in the first N_CLS lanes.
    """
    f32 = jnp.float32
    b, s, _ = tok_idx_ref.shape
    scale = 1.0 / float(HEAD_DIM) ** 0.5

    def get(name):
        r, nr, nc = LAYOUT[name]
        return slab_ref[r:r + nr, :nc]

    # ---- token embeddings: nn.Embedding gather as N_CLS+1 masked adds -------
    tok_emb = get('tok_emb')                                   # (N_CLS+1, D)
    tok_idx = tok_idx_ref[...]                                 # (B, S, 1) int32
    x3 = jnp.zeros((b, s, D), dtype=f32)
    for c in range(N_CLS + 1):
        mask = (tok_idx == c).astype(f32)                      # (B, S, 1)
        x3 = x3 + mask * tok_emb[c:c + 1, :].reshape(1, 1, D)

    # ---- PosEncoderMLP: Linear(site_dim, HID) -> GELU -> Linear(HID, D) -----
    p2 = pos_ref[...].reshape(b * s, SITE_DIM)                 # (B*S, 2)
    w1p = get('pos_fc1_w')                                     # (SITE_DIM, HID)
    ph = p2[:, 0:1] * w1p[0:1, :]
    for j in range(1, SITE_DIM):                               # K=2: two FMAs beat a matmul
        ph = ph + p2[:, j:j + 1] * w1p[j:j + 1, :]
    ph = ph + get('pos_fc1_b')
    # TODO(synk): PyTorch nn.GELU default is exact (erf); tanh approx used for
    # safe Mosaic lowering (~1e-3-level activation drift).
    ph = jax.nn.gelu(ph, approximate=True)
    pos_enc = jnp.dot(ph, get('pos_fc2_w'), preferred_element_type=f32) + get('pos_fc2_b')

    x = x3.reshape(b * s, D) + pos_enc                         # (B*S, D)

    # TODO(synk): `Block` source not provided; a ViT-style pre-norm block is assumed.
    for l in range(DEPTH):
        # ---- multi-head self-attention (fused QKV, fused output projection) --
        h = _layernorm(x, get(f'ln1_w_{l}'), get(f'ln1_b_{l}'))
        qkv = jnp.dot(h, get(f'wqkv_{l}'),
                      preferred_element_type=f32) + get(f'bqkv_{l}')      # (B*S, 3D)

        def heads(base):
            # static lane slices -> head-batched activations (H*B, S, hd)
            return jnp.stack(
                [qkv[:, base + hh * HEAD_DIM: base + (hh + 1) * HEAD_DIM]
                     .reshape(b, s, HEAD_DIM) for hh in range(N_HEADS)],
                axis=0).reshape(N_HEADS * b, s, HEAD_DIM)

        qh, kh, vh = heads(0), heads(D), heads(2 * D)
        sc = jnp.einsum('nsd,ntd->nst', qh, kh,
                        preferred_element_type=f32) * scale              # (H*B, S, S)
        sc = sc - jnp.max(sc, axis=-1, keepdims=True)
        e = jnp.exp(sc)
        p = e * pl.reciprocal(jnp.sum(e, axis=-1, keepdims=True), approx=True)
        o = jnp.einsum('nst,ntd->nsd', p, vh,
                       preferred_element_type=f32)                       # (H*B, S, hd)
        o = o.reshape(N_HEADS, b * s, HEAD_DIM)
        # concat(heads) along lanes, then ONE (B*S, D) @ (D, D) projection.
        o_cat = jnp.concatenate([o[hh] for hh in range(N_HEADS)], axis=-1)
        attn = jnp.dot(o_cat, get(f'wproj_{l}'),
                       preferred_element_type=f32) + get(f'bproj_{l}')
        x = x + attn                                                     # residual 1

        # ---- MLP ----
        m = _layernorm(x, get(f'ln2_w_{l}'), get(f'ln2_b_{l}'))
        m = jnp.dot(m, get(f'fc1_w_{l}'), preferred_element_type=f32) + get(f'fc1_b_{l}')
        m = jax.nn.gelu(m, approximate=True)
        m = jnp.dot(m, get(f'fc2_w_{l}'), preferred_element_type=f32) + get(f'fc2_b_{l}')
        x = x + m                                                        # residual 2

    # ---- final LayerNorm + head on the cls token; lane-dense (B, 128) store --
    cls_final = x.reshape(b, s, D)[:, 0, :]                    # (B, D)
    hf = _layernorm(cls_final, get('norm_w'), get('norm_b'))
    out_ref[...] = (jnp.dot(hf, get('head_w'), preferred_element_type=f32)
                    + get('head_b')).astype(out_ref.dtype)


# ----------------------------- wrapper ---------------------------------------
def run_transformer_core(tok_idx, pos, slab):
    bsz = tok_idx.shape[0]
    # Grid-less call: the full working set (inputs ~1.5 KB + packed weights
    # ~300 KB) sits in VMEM for one invocation -> no pipelining machinery and
    # no per-step overhead.  Fits every generation (v5e/v6e 128 MiB, v7x 64 MiB).
    # TODO(synk): if batch ever grows, add a 'parallel' grid axis over tokens
    # to use both v7x TensorCores.
    cost = pl.CostEstimate(flops=650_000, transcendentals=4_500,
                           bytes_accessed=SLAB_ROWS * LANES * 4 + 2_048)
    return pl.pallas_call(
        fused_transformer_kernel,
        out_shape=jax.ShapeDtypeStruct((bsz, LANES), jnp.float32),
        cost_estimate=cost,
    )(tok_idx, pos, slab)


@jax.jit
def transformer_forward(params, site_coords, site_cls, trg_coord):
    """Eval-mode forward (dropouts identity); returns logits (B, N_CLS)."""
    bsz = site_cls.shape[0]
    # Tiny input formatting only (fused into the transfer by XLA):
    # token-type index per slot -- N_CLS marks the cls token, else the site class.
    tok_idx = jnp.concatenate(
        [jnp.full((bsz, 1), N_CLS, dtype=jnp.int32), site_cls.astype(jnp.int32)],
        axis=1)[..., None]                                              # (B, S, 1)
    pos = jnp.concatenate([trg_coord[:, None, :], site_coords], axis=1)  # (B, S, 2)
    logits = run_transformer_core(tok_idx, pos, params['slab'])[:, :N_CLS]
    # TODO(synk): loss_crit / eval_crit not modeled; eval path with target=None.
    return {'logits': logits, 'eval_score': None}


# --------------------------- parameter init ----------------------------------
def init_raw_params(key):
    def rnd(k, shape, scale=0.02):
        return jax.random.normal(k, shape, dtype=jnp.float32) * scale

    ks = jax.random.split(key, 16)
    return {
        'cls_emb': rnd(ks[0], (N_CLS, D), 1.0),
        # module inits cls_token to zeros; small random values exercise the path
        'cls_token': rnd(ks[1], (1, 1, D)),
        'pos_fc1_w': rnd(ks[2], (SITE_DIM, HID)),
        'pos_fc1_b': rnd(ks[3], (HID,)),
        'pos_fc2_w': rnd(ks[4], (HID, D)),
        'pos_fc2_b': rnd(ks[5], (D,)),
        'ln1_w': jnp.ones((DEPTH, D), jnp.float32),
        'ln1_b': jnp.zeros((DEPTH, D), jnp.float32),
        'wqkv': rnd(ks[6], (DEPTH, D, 3 * D)),
        'bqkv': rnd(ks[7], (DEPTH, 3 * D)),
        'wproj': rnd(ks[8], (DEPTH, D, D)),
        'bproj': rnd(ks[9], (DEPTH, D)),
        'ln2_w': jnp.ones((DEPTH, D), jnp.float32),
        'ln2_b': jnp.zeros((DEPTH, D), jnp.float32),
        'fc1_w': rnd(ks[10], (DEPTH, D, HID)),
        'fc1_b': rnd(ks[11], (DEPTH, HID)),
        'fc2_w': rnd(ks[12], (DEPTH, HID, D)),
        'fc2_b': rnd(ks[13], (DEPTH, D)),
        'norm_w': jnp.ones((D,), jnp.float32),
        'norm_b': jnp.zeros((D,), jnp.float32),
        'head_w': rnd(ks[14], (D, N_CLS)),
        'head_b': rnd(ks[15], (N_CLS,)),
    }


def pack_params(raw):
    """Pack all parameters into one lane-dense (SLAB_ROWS, 128) f32 slab."""
    slab = jnp.zeros((SLAB_ROWS, LANES), jnp.float32)

    def put(s, name, val):
        val = jnp.asarray(val, jnp.float32)
        if val.ndim == 1:
            val = val[None, :]
        r, nr, nc = LAYOUT[name]
        assert val.shape[0] <= nr and val.shape[1] <= nc, name
        return s.at[r:r + val.shape[0], :val.shape[1]].set(val)

    slab = put(slab, 'tok_emb',
               jnp.concatenate([raw['cls_emb'], raw['cls_token'].reshape(1, D)], axis=0))
    slab = put(slab, 'pos_fc1_w', raw['pos_fc1_w'])
    slab = put(slab, 'pos_fc1_b', raw['pos_fc1_b'])
    slab = put(slab, 'pos_fc2_w', raw['pos_fc2_w'])
    slab = put(slab, 'pos_fc2_b', raw['pos_fc2_b'])
    for l in range(DEPTH):
        slab = put(slab, f'ln1_w_{l}', raw['ln1_w'][l])
        slab = put(slab, f'ln1_b_{l}', raw['ln1_b'][l])
        slab = put(slab, f'wqkv_{l}', raw['wqkv'][l])
        slab = put(slab, f'bqkv_{l}', raw['bqkv'][l])
        slab = put(slab, f'wproj_{l}', raw['wproj'][l])
        slab = put(slab, f'bproj_{l}', raw['bproj'][l])
        slab = put(slab, f'ln2_w_{l}', raw['ln2_w'][l])
        slab = put(slab, f'ln2_b_{l}', raw['ln2_b'][l])
        slab = put(slab, f'fc1_w_{l}', raw['fc1_w'][l])
        slab = put(slab, f'fc1_b_{l}', raw['fc1_b'][l])
        slab = put(slab, f'fc2_w_{l}', raw['fc2_w'][l])
        slab = put(slab, f'fc2_b_{l}', raw['fc2_b'][l])
    slab = put(slab, 'norm_w', raw['norm_w'])
    slab = put(slab, 'norm_b', raw['norm_b'])
    slab = put(slab, 'head_w', raw['head_w'])
    slab = put(slab, 'head_b', raw['head_b'])
    return slab


# --------------------------- pure-JAX reference -------------------------------
def reference_forward(raw, site_coords, site_cls, trg_coord):
    """Pure-JAX reference of the same eval forward (correctness check only)."""
    bsz = site_cls.shape[0]

    def ln(t, w, b):
        mu = jnp.mean(t, axis=-1, keepdims=True)
        var = jnp.mean((t - mu) ** 2, axis=-1, keepdims=True)
        return (t - mu) * jax.lax.rsqrt(var + EPS) * w + b

    cls_enc = raw['cls_emb'][site_cls]                              # (B, N, D)
    cls_tok = jnp.broadcast_to(raw['cls_token'], (bsz, 1, D))
    x = jnp.concatenate([cls_tok, cls_enc], axis=1)                 # (B, S, D)
    pos = jnp.concatenate([trg_coord[:, None, :], site_coords], axis=1)
    ph = jax.nn.gelu(pos @ raw['pos_fc1_w'] + raw['pos_fc1_b'], approximate=True)
    x = x + (ph @ raw['pos_fc2_w'] + raw['pos_fc2_b'])

    for l in range(DEPTH):
        h = ln(x, raw['ln1_w'][l], raw['ln1_b'][l])
        qkv = h @ raw['wqkv'][l] + raw['bqkv'][l]                   # (B, S, 3D)
        q, k, v = jnp.split(qkv, 3, axis=-1)

        def split_heads(t):
            return t.reshape(bsz, SEQ, N_HEADS, HEAD_DIM).transpose(0, 2, 1, 3)

        qh, kh, vh = split_heads(q), split_heads(k), split_heads(v)
        att = jax.nn.softmax(
            jnp.einsum('bhsd,bhtd->bhst', qh, kh) / float(HEAD_DIM) ** 0.5, axis=-1)
        o = jnp.einsum('bhst,bhtd->bhsd', att, vh).transpose(0, 2, 1, 3).reshape(bsz, SEQ, D)
        x = x + (o @ raw['wproj'][l] + raw['bproj'][l])

        m = ln(x, raw['ln2_w'][l], raw['ln2_b'][l])
        m = jax.nn.gelu(m @ raw['fc1_w'][l] + raw['fc1_b'][l], approximate=True)
        x = x + (m @ raw['fc2_w'][l] + raw['fc2_b'][l])

    x = ln(x, raw['norm_w'], raw['norm_b'])
    return x[:, 0] @ raw['head_w'] + raw['head_b']


# --------------------------------- main ----------------------------------------
if __name__ == "__main__":
    key = jax.random.PRNGKey(0)
    k_par, k_coord, k_cls, k_trg = jax.random.split(key, 4)

    raw = init_raw_params(k_par)
    params = {'slab': pack_params(raw)}

    site_coords = jax.random.normal(k_coord, (B, N_SITES, SITE_DIM), dtype=jnp.float32)
    site_cls = jax.random.randint(k_cls, (B, N_SITES), 0, N_CLS, dtype=jnp.int32)
    trg_coord = jax.random.normal(k_trg, (B, SITE_DIM), dtype=jnp.float32)

    out = transformer_forward(params, site_coords, site_cls, trg_coord)
    logits = jax.block_until_ready(out['logits'])
    assert logits.shape == (B, N_CLS)
    assert bool(jnp.all(jnp.isfinite(logits)))

    ref = reference_forward(raw, site_coords, site_cls, trg_coord)
    assert bool(jnp.allclose(logits, ref, rtol=2e-2, atol=2e-2))
    print("KERNEL_OK")
</pallas_src>

<mosaic_0001>
module attributes {stable_mosaic.version = 11 : i64} {
  func.func @fused_transformer_kernel(%arg0: memref<2x8x1xi32, #tpu.memory_space<vmem>>, %arg1: memref<2x8x2xf32, #tpu.memory_space<vmem>>, %arg2: memref<600x128xf32, #tpu.memory_space<vmem>>, %arg3: memref<2x128xf32, #tpu.memory_space<vmem>>) attributes {dimension_semantics = [], scalar_prefetch = 0 : i64, scratch_operands = 0 : i64, tpu.core_type = #tpu.core_type<tc>} {
    %c0 = arith.constant 0 : index
    %c0_0 = arith.constant 0 : index
    %0 = vector.load %arg2[%c0, %c0_0] : memref<600x128xf32, #tpu.memory_space<vmem>>, vector<4x32xf32>
    %c0_1 = arith.constant 0 : index
    %c0_2 = arith.constant 0 : index
    %c0_3 = arith.constant 0 : index
    %1 = vector.load %arg0[%c0_1, %c0_2, %c0_3] : memref<2x8x1xi32, #tpu.memory_space<vmem>>, vector<2x8x1xi32>
    %cst = arith.constant 0.000000e+00 : f32
    %2 = vector.broadcast %cst : f32 to vector<2x8x32xf32>
    %c0_i32 = arith.constant 0 : i32
    %3 = vector.broadcast %c0_i32 : i32 to vector<2x8x1xi32>
    %4 = arith.cmpi eq, %1, %3 : vector<2x8x1xi32>
    %5 = arith.extui %4 : vector<2x8x1xi1> to vector<2x8x1xi32>
    %6 = arith.sitofp %5 : vector<2x8x1xi32> to vector<2x8x1xf32>
    %7 = vector.extract_strided_slice %0 {offsets = [0, 0], sizes = [1, 32], strides = [1, 1]} : vector<4x32xf32> to vector<1x32xf32>
    %8 = vector.shape_cast %7 : vector<1x32xf32> to vector<1x1x32xf32>
    %9 = vector.broadcast %6 : vector<2x8x1xf32> to vector<2x8x32xf32>
    %10 = vector.broadcast %8 : vector<1x1x32xf32> to vector<2x8x32xf32>
    %11 = arith.mulf %9, %10 : vector<2x8x32xf32>
    %12 = arith.addf %2, %11 : vector<2x8x32xf32>
    %c1_i32 = arith.constant 1 : i32
    %13 = vector.broadcast %c1_i32 : i32 to vector<2x8x1xi32>
    %14 = arith.cmpi eq, %1, %13 : vector<2x8x1xi32>
    %15 = arith.extui %14 : vector<2x8x1xi1> to vector<2x8x1xi32>
    %16 = arith.sitofp %15 : vector<2x8x1xi32> to vector<2x8x1xf32>
    %17 = vector.extract_strided_slice %0 {offsets = [1, 0], sizes = [1, 32], strides = [1, 1]} : vector<4x32xf32> to vector<1x32xf32>
    %18 = vector.shape_cast %17 : vector<1x32xf32> to vector<1x1x32xf32>
    %19 = vector.broadcast %16 : vector<2x8x1xf32> to vector<2x8x32xf32>
    %20 = vector.broadcast %18 : vector<1x1x32xf32> to vector<2x8x32xf32>
    %21 = arith.mulf %19, %20 : vector<2x8x32xf32>
    %22 = arith.addf %12, %21 : vector<2x8x32xf32>
    %c2_i32 = arith.constant 2 : i32
    %23 = vector.broadcast %c2_i32 : i32 to vector<2x8x1xi32>
    %24 = arith.cmpi eq, %1, %23 : vector<2x8x1xi32>
    %25 = arith.extui %24 : vector<2x8x1xi1> to vector<2x8x1xi32>
    %26 = arith.sitofp %25 : vector<2x8x1xi32> to vector<2x8x1xf32>
    %27 = vector.extract_strided_slice %0 {offsets = [2, 0], sizes = [1, 32], strides = [1, 1]} : vector<4x32xf32> to vector<1x32xf32>
    %28 = vector.shape_cast %27 : vector<1x32xf32> to vector<1x1x32xf32>
    %29 = vector.broadcast %26 : vector<2x8x1xf32> to vector<2x8x32xf32>
    %30 = vector.broadcast %28 : vector<1x1x32xf32> to vector<2x8x32xf32>
    %31 = arith.mulf %29, %30 : vector<2x8x32xf32>
    %32 = arith.addf %22, %31 : vector<2x8x32xf32>
    %c3_i32 = arith.constant 3 : i32
    %33 = vector.broadcast %c3_i32 : i32 to vector<2x8x1xi32>
    %34 = arith.cmpi eq, %1, %33 : vector<2x8x1xi32>
    %35 = arith.extui %34 : vector<2x8x1xi1> to vector<2x8x1xi32>
    %36 = arith.sitofp %35 : vector<2x8x1xi32> to vector<2x8x1xf32>
    %37 = vector.extract_strided_slice %0 {offsets = [3, 0], sizes = [1, 32], strides = [1, 1]} : vector<4x32xf32> to vector<1x32xf32>
    %38 = vector.shape_cast %37 : vector<1x32xf32> to vector<1x1x32xf32>
    %39 = vector.broadcast %36 : vector<2x8x1xf32> to vector<2x8x32xf32>
    %40 = vector.broadcast %38 : vector<1x1x32xf32> to vector<2x8x32xf32>
    %41 = arith.mulf %39, %40 : vector<2x8x32xf32>
    %42 = arith.addf %32, %41 : vector<2x8x32xf32>
    %c0_4 = arith.constant 0 : index
    %c0_5 = arith.constant 0 : index
    %c0_6 = arith.constant 0 : index
    %43 = vector.load %arg1[%c0_4, %c0_5, %c0_6] : memref<2x8x2xf32, #tpu.memory_space<vmem>>, vector<2x8x2xf32>
    %44 = vector.shape_cast %43 : vector<2x8x2xf32> to vector<16x2xf32>
    %c8 = arith.constant 8 : index
    %c0_7 = arith.constant 0 : index
    %45 = vector.load %arg2[%c8, %c0_7] : memref<600x128xf32, #tpu.memory_space<vmem>>, vector<2x64xf32>
    %46 = vector.extract_strided_slice %44 {offsets = [0, 0], sizes = [16, 1], strides = [1, 1]} : vector<16x2xf32> to vector<16x1xf32>
    %47 = vector.extract_strided_slice %45 {offsets = [0, 0], sizes = [1, 64], strides = [1, 1]} : vector<2x64xf32> to vector<1x64xf32>
    %48 = vector.broadcast %46 : vector<16x1xf32> to vector<16x64xf32>
    %49 = vector.broadcast %47 : vector<1x64xf32> to vector<16x64xf32>
    %50 = arith.mulf %48, %49 : vector<16x64xf32>
    %51 = vector.extract_strided_slice %44 {offsets = [0, 1], sizes = [16, 1], strides = [1, 1]} : vector<16x2xf32> to vector<16x1xf32>
    %52 = vector.extract_strided_slice %45 {offsets = [1, 0], sizes = [1, 64], strides = [1, 1]} : vector<2x64xf32> to vector<1x64xf32>
    %53 = vector.broadcast %51 : vector<16x1xf32> to vector<16x64xf32>
    %54 = vector.broadcast %52 : vector<1x64xf32> to vector<16x64xf32>
    %55 = arith.mulf %53, %54 : vector<16x64xf32>
    %56 = arith.addf %50, %55 : vector<16x64xf32>
    %c16 = arith.constant 16 : index
    %c0_8 = arith.constant 0 : index
    %57 = vector.load %arg2[%c16, %c0_8] : memref<600x128xf32, #tpu.memory_space<vmem>>, vector<1x64xf32>
    %58 = vector.broadcast %57 : vector<1x64xf32> to vector<16x64xf32>
    %59 = arith.addf %56, %58 : vector<16x64xf32>
    %60 = arith.mulf %59, %59 : vector<16x64xf32>
    %61 = arith.mulf %59, %60 : vector<16x64xf32>
    %cst_9 = arith.constant 4.471500e-02 : f32
    %62 = vector.broadcast %cst_9 : f32 to vector<16x64xf32>
    %63 = arith.mulf %62, %61 : vector<16x64xf32>
    %64 = arith.addf %59, %63 : vector<16x64xf32>
    %cst_10 = arith.constant 0.797884583 : f32
    %65 = vector.broadcast %cst_10 : f32 to vector<16x64xf32>
    %66 = arith.mulf %65, %64 : vector<16x64xf32>
    %67 = math.tanh %66 : vector<16x64xf32>
    %cst_11 = arith.constant 1.000000e+00 : f32
    %68 = vector.broadcast %cst_11 : f32 to vector<16x64xf32>
    %69 = arith.addf %68, %67 : vector<16x64xf32>
    %cst_12 = arith.constant 5.000000e-01 : f32
    %70 = vector.broadcast %cst_12 : f32 to vector<16x64xf32>
    %71 = arith.mulf %70, %69 : vector<16x64xf32>
    %72 = arith.mulf %59, %71 : vector<16x64xf32>
    %c24 = arith.constant 24 : index
    %c0_13 = arith.constant 0 : index
    %73 = vector.load %arg2[%c24, %c0_13] : memref<600x128xf32, #tpu.memory_space<vmem>>, vector<64x32xf32>
    %cst_14 = arith.constant dense<0.000000e+00> : vector<16x32xf32>
    %74 = tpu.matmul %72, %73, %cst_14 {dimension_numbers = #tpu.dot_dimension_numbers<[1], [0], [0], [1], [0, 0, 1, 1], [], []>} : vector<16x64xf32>, vector<64x32xf32>, vector<16x32xf32> -> vector<16x32xf32>
    %c88 = arith.constant 88 : index
    %c0_15 = arith.constant 0 : index
    %75 = vector.load %arg2[%c88, %c0_15] : memref<600x128xf32, #tpu.memory_space<vmem>>, vector<1x32xf32>
    %76 = vector.broadcast %75 : vector<1x32xf32> to vector<16x32xf32>
    %77 = arith.addf %74, %76 : vector<16x32xf32>
    %78 = vector.shape_cast %42 : vector<2x8x32xf32> to vector<16x32xf32>
    %79 = arith.addf %78, %77 : vector<16x32xf32>
    %c96 = arith.constant 96 : index
    %c0_16 = arith.constant 0 : index
    %80 = vector.load %arg2[%c96, %c0_16] : memref<600x128xf32, #tpu.memory_space<vmem>>, vector<1x32xf32>
    %c104 = arith.constant 104 : index
    %c0_17 = arith.constant 0 : index
    %81 = vector.load %arg2[%c104, %c0_17] : memref<600x128xf32, #tpu.memory_space<vmem>>, vector<1x32xf32>
    %cst_18 = arith.constant dense<0.000000e+00> : vector<16xf32>
    %82 = vector.multi_reduction <add>, %79, %cst_18 [1] : vector<16x32xf32> to vector<16xf32>
    %83 = vector.shape_cast %82 : vector<16xf32> to vector<16x1xf32>
    %cst_19 = arith.constant 3.200000e+01 : f32
    %84 = vector.broadcast %cst_19 : f32 to vector<16x1xf32>
    %85 = arith.divf %83, %84 : vector<16x1xf32>
    %86 = vector.broadcast %85 : vector<16x1xf32> to vector<16x32xf32>
    %87 = arith.subf %79, %86 : vector<16x32xf32>
    %88 = arith.mulf %87, %87 : vector<16x32xf32>
    %cst_20 = arith.constant dense<0.000000e+00> : vector<16xf32>
    %89 = vector.multi_reduction <add>, %88, %cst_20 [1] : vector<16x32xf32> to vector<16xf32>
    %90 = vector.shape_cast %89 : vector<16xf32> to vector<16x1xf32>
    %cst_21 = arith.constant 3.200000e+01 : f32
    %91 = vector.broadcast %cst_21 : f32 to vector<16x1xf32>
    %92 = arith.divf %90, %91 : vector<16x1xf32>
    %93 = vector.broadcast %85 : vector<16x1xf32> to vector<16x32xf32>
    %94 = arith.subf %79, %93 : vector<16x32xf32>
    %cst_22 = arith.constant 9.99999997E-7 : f32
    %95 = vector.broadcast %cst_22 : f32 to vector<16x1xf32>
    %96 = arith.addf %92, %95 : vector<16x1xf32>
    %97 = math.rsqrt %96 : vector<16x1xf32>
    %98 = vector.broadcast %97 : vector<16x1xf32> to vector<16x32xf32>
    %99 = arith.mulf %94, %98 : vector<16x32xf32>
    %100 = vector.broadcast %80 : vector<1x32xf32> to vector<16x32xf32>
    %101 = arith.mulf %99, %100 : vector<16x32xf32>
    %102 = vector.broadcast %81 : vector<1x32xf32> to vector<16x32xf32>
    %103 = arith.addf %101, %102 : vector<16x32xf32>
    %c112 = arith.constant 112 : index
    %c0_23 = arith.constant 0 : index
    %104 = vector.load %arg2[%c112, %c0_23] : memref<600x128xf32, #tpu.memory_space<vmem>>, vector<32x96xf32>
    %cst_24 = arith.constant dense<0.000000e+00> : vector<16x96xf32>
    %105 = tpu.matmul %103, %104, %cst_24 {dimension_numbers = #tpu.dot_dimension_numbers<[1], [0], [0], [1], [0, 0, 1, 1], [], []>} : vector<16x32xf32>, vector<32x96xf32>, vector<16x96xf32> -> vector<16x96xf32>
    %c144 = arith.constant 144 : index
    %c0_25 = arith.constant 0 : index
    %106 = vector.load %arg2[%c144, %c0_25] : memref<600x128xf32, #tpu.memory_space<vmem>>, vector<1x96xf32>
    %107 = vector.broadcast %106 : vector<1x96xf32> to vector<16x96xf32>
    %108 = arith.addf %105, %107 : vector<16x96xf32>
    %109 = vector.extract_strided_slice %108 {offsets = [0, 0], sizes = [16, 8], strides = [1, 1]} : vector<16x96xf32> to vector<16x8xf32>
    %110 = vector.shape_cast %109 : vector<16x8xf32> to vector<2x8x8xf32>
    %111 = vector.extract_strided_slice %108 {offsets = [0, 8], sizes = [16, 8], strides = [1, 1]} : vector<16x96xf32> to vector<16x8xf32>
    %112 = vector.shape_cast %111 : vector<16x8xf32> to vector<2x8x8xf32>
    %113 = vector.extract_strided_slice %108 {offsets = [0, 16], sizes = [16, 8], strides = [1, 1]} : vector<16x96xf32> to vector<16x8xf32>
    %114 = vector.shape_cast %113 : vector<16x8xf32> to vector<2x8x8xf32>
    %115 = vector.extract_strided_slice %108 {offsets = [0, 24], sizes = [16, 8], strides = [1, 1]} : vector<16x96xf32> to vector<16x8xf32>
    %116 = vector.shape_cast %115 : vector<16x8xf32> to vector<2x8x8xf32>
    %117 = vector.shape_cast %110 : vector<2x8x8xf32> to vector<1x2x8x8xf32>
    %118 = vector.shape_cast %112 : vector<2x8x8xf32> to vector<1x2x8x8xf32>
    %119 = vector.shape_cast %114 : vector<2x8x8xf32> to vector<1x2x8x8xf32>
    %120 = vector.shape_cast %116 : vector<2x8x8xf32> to vector<1x2x8x8xf32>
    %121 = tpu.concatenate %117, %118, %119, %120 in 0 : vector<1x2x8x8xf32>, vector<1x2x8x8xf32>, vector<1x2x8x8xf32>, vector<1x2x8x8xf32> -> vector<4x2x8x8xf32>
    %122 = vector.shape_cast %121 : vector<4x2x8x8xf32> to vector<8x8x8xf32>
    %123 = vector.extract_strided_slice %108 {offsets = [0, 32], sizes = [16, 8], strides = [1, 1]} : vector<16x96xf32> to vector<16x8xf32>
    %124 = vector.shape_cast %123 : vector<16x8xf32> to vector<2x8x8xf32>
    %125 = vector.extract_strided_slice %108 {offsets = [0, 40], sizes = [16, 8], strides = [1, 1]} : vector<16x96xf32> to vector<16x8xf32>
    %126 = vector.shape_cast %125 : vector<16x8xf32> to vector<2x8x8xf32>
    %127 = vector.extract_strided_slice %108 {offsets = [0, 48], sizes = [16, 8], strides = [1, 1]} : vector<16x96xf32> to vector<16x8xf32>
    %128 = vector.shape_cast %127 : vector<16x8xf32> to vector<2x8x8xf32>
    %129 = vector.extract_strided_slice %108 {offsets = [0, 56], sizes = [16, 8], strides = [1, 1]} : vector<16x96xf32> to vector<16x8xf32>
    %130 = vector.shape_cast %129 : vector<16x8xf32> to vector<2x8x8xf32>
    %131 = vector.shape_cast %124 : vector<2x8x8xf32> to vector<1x2x8x8xf32>
    %132 = vector.shape_cast %126 : vector<2x8x8xf32> to vector<1x2x8x8xf32>
    %133 = vector.shape_cast %128 : vector<2x8x8xf32> to vector<1x2x8x8xf32>
    %134 = vector.shape_cast %130 : vector<2x8x8xf32> to vector<1x2x8x8xf32>
    %135 = tpu.concatenate %131, %132, %133, %134 in 0 : vector<1x2x8x8xf32>, vector<1x2x8x8xf32>, vector<1x2x8x8xf32>, vector<1x2x8x8xf32> -> vector<4x2x8x8xf32>
    %136 = vector.shape_cast %135 : vector<4x2x8x8xf32> to vector<8x8x8xf32>
    %137 = vector.extract_strided_slice %108 {offsets = [0, 64], sizes = [16, 8], strides = [1, 1]} : vector<16x96xf32> to vector<16x8xf32>
    %138 = vector.shape_cast %137 : vector<16x8xf32> to vector<2x8x8xf32>
    %139 = vector.extract_strided_slice %108 {offsets = [0, 72], sizes = [16, 8], strides = [1, 1]} : vector<16x96xf32> to vector<16x8xf32>
    %140 = vector.shape_cast %139 : vector<16x8xf32> to vector<2x8x8xf32>
    %141 = vector.extract_strided_slice %108 {offsets = [0, 80], sizes = [16, 8], strides = [1, 1]} : vector<16x96xf32> to vector<16x8xf32>
    %142 = vector.shape_cast %141 : vector<16x8xf32> to vector<2x8x8xf32>
    %143 = vector.extract_strided_slice %108 {offsets = [0, 88], sizes = [16, 8], strides = [1, 1]} : vector<16x96xf32> to vector<16x8xf32>
    %144 = vector.shape_cast %143 : vector<16x8xf32> to vector<2x8x8xf32>
    %145 = vector.shape_cast %138 : vector<2x8x8xf32> to vector<1x2x8x8xf32>
    %146 = vector.shape_cast %140 : vector<2x8x8xf32> to vector<1x2x8x8xf32>
    %147 = vector.shape_cast %142 : vector<2x8x8xf32> to vector<1x2x8x8xf32>
    %148 = vector.shape_cast %144 : vector<2x8x8xf32> to vector<1x2x8x8xf32>
    %149 = tpu.concatenate %145, %146, %147, %148 in 0 : vector<1x2x8x8xf32>, vector<1x2x8x8xf32>, vector<1x2x8x8xf32>, vector<1x2x8x8xf32> -> vector<4x2x8x8xf32>
    %150 = vector.shape_cast %149 : vector<4x2x8x8xf32> to vector<8x8x8xf32>
    "tpu.trace_start"() <{level = 10 : i32, message = "nsd,ntd->nst"}> : () -> ()
    %cst_26 = arith.constant dense<0.000000e+00> : vector<8x8x8xf32>
    %151 = tpu.matmul %122, %136, %cst_26 {dimension_numbers = #tpu.dot_dimension_numbers<[2], [2], [1], [1], [0, 0, 0, 1, 1, 1], [0], [0]>} : vector<8x8x8xf32>, vector<8x8x8xf32>, vector<8x8x8xf32> -> vector<8x8x8xf32>
    "tpu.trace_stop"() : () -> ()
    %cst_27 = arith.constant 0.353553385 : f32
    %152 = vector.broadcast %cst_27 : f32 to vector<8x8x8xf32>
    %153 = arith.mulf %151, %152 : vector<8x8x8xf32>
    %cst_28 = arith.constant dense<0xFF800000> : vector<8x8xf32>
    %154 = vector.multi_reduction <maximumf>, %153, %cst_28 [2] : vector<8x8x8xf32> to vector<8x8xf32>
    %155 = vector.shape_cast %154 : vector<8x8xf32> to vector<8x8x1xf32>
    %156 = vector.broadcast %155 : vector<8x8x1xf32> to vector<8x8x8xf32>
    %157 = arith.subf %153, %156 : vector<8x8x8xf32>
    %158 = math.exp %157 : vector<8x8x8xf32>
    %cst_29 = arith.constant dense<0.000000e+00> : vector<8x8xf32>
    %159 = vector.multi_reduction <add>, %158, %cst_29 [2] : vector<8x8x8xf32> to vector<8x8xf32>
    %160 = vector.shape_cast %159 : vector<8x8xf32> to vector<8x8x1xf32>
    %161 = tpu.reciprocal %160 {approx = true} : vector<8x8x1xf32> -> vector<8x8x1xf32>
    %162 = vector.broadcast %161 : vector<8x8x1xf32> to vector<8x8x8xf32>
    %163 = arith.mulf %158, %162 : vector<8x8x8xf32>
    "tpu.trace_start"() <{level = 10 : i32, message = "nst,ntd->nsd"}> : () -> ()
    %cst_30 = arith.constant dense<0.000000e+00> : vector<8x8x8xf32>
    %164 = tpu.matmul %163, %150, %cst_30 {dimension_numbers = #tpu.dot_dimension_numbers<[2], [1], [1], [2], [0, 0, 0, 1, 1, 2], [0], [0]>} : vector<8x8x8xf32>, vector<8x8x8xf32>, vector<8x8x8xf32> -> vector<8x8x8xf32>
    "tpu.trace_stop"() : () -> ()
    %165 = vector.shape_cast %164 : vector<8x8x8xf32> to vector<4x16x8xf32>
    %166 = vector.extract_strided_slice %165 {offsets = [0, 0, 0], sizes = [1, 16, 8], strides = [1, 1, 1]} : vector<4x16x8xf32> to vector<1x16x8xf32>
    %167 = vector.shape_cast %166 : vector<1x16x8xf32> to vector<16x8xf32>
    %168 = vector.extract_strided_slice %165 {offsets = [1, 0, 0], sizes = [1, 16, 8], strides = [1, 1, 1]} : vector<4x16x8xf32> to vector<1x16x8xf32>
    %169 = vector.shape_cast %168 : vector<1x16x8xf32> to vector<16x8xf32>
    %170 = vector.extract_strided_slice %165 {offsets = [2, 0, 0], sizes = [1, 16, 8], strides = [1, 1, 1]} : vector<4x16x8xf32> to vector<1x16x8xf32>
    %171 = vector.shape_cast %170 : vector<1x16x8xf32> to vector<16x8xf32>
    %172 = vector.extract_strided_slice %165 {offsets = [3, 0, 0], sizes = [1, 16, 8], strides = [1, 1, 1]} : vector<4x16x8xf32> to vector<1x16x8xf32>
    %173 = vector.shape_cast %172 : vector<1x16x8xf32> to vector<16x8xf32>
    %174 = tpu.concatenate %167, %169, %171, %173 in 1 : vector<16x8xf32>, vector<16x8xf32>, vector<16x8xf32>, vector<16x8xf32> -> vector<16x32xf32>
    %c152 = arith.constant 152 : index
    %c0_31 = arith.constant 0 : index
    %175 = vector.load %arg2[%c152, %c0_31] : memref<600x128xf32, #tpu.memory_space<vmem>>, vector<32x32xf32>
    %cst_32 = arith.constant dense<0.000000e+00> : vector<16x32xf32>
    %176 = tpu.matmul %174, %175, %cst_32 {dimension_numbers = #tpu.dot_dimension_numbers<[1], [0], [0], [1], [0, 0, 1, 1], [], []>} : vector<16x32xf32>, vector<32x32xf32>, vector<16x32xf32> -> vector<16x32xf32>
    %c184 = arith.constant 184 : index
    %c0_33 = arith.constant 0 : index
    %177 = vector.load %arg2[%c184, %c0_33] : memref<600x128xf32, #tpu.memory_space<vmem>>, vector<1x32xf32>
    %178 = vector.broadcast %177 : vector<1x32xf32> to vector<16x32xf32>
    %179 = arith.addf %176, %178 : vector<16x32xf32>
    %180 = arith.addf %79, %179 : vector<16x32xf32>
    %c192 = arith.constant 192 : index
    %c0_34 = arith.constant 0 : index
    %181 = vector.load %arg2[%c192, %c0_34] : memref<600x128xf32, #tpu.memory_space<vmem>>, vector<1x32xf32>
    %c200 = arith.constant 200 : index
    %c0_35 = arith.constant 0 : index
    %182 = vector.load %arg2[%c200, %c0_35] : memref<600x128xf32, #tpu.memory_space<vmem>>, vector<1x32xf32>
    %cst_36 = arith.constant dense<0.000000e+00> : vector<16xf32>
    %183 = vector.multi_reduction <add>, %180, %cst_36 [1] : vector<16x32xf32> to vector<16xf32>
    %184 = vector.shape_cast %183 : vector<16xf32> to vector<16x1xf32>
    %cst_37 = arith.constant 3.200000e+01 : f32
    %185 = vector.broadcast %cst_37 : f32 to vector<16x1xf32>
    %186 = arith.divf %184, %185 : vector<16x1xf32>
    %187 = vector.broadcast %186 : vector<16x1xf32> to vector<16x32xf32>
    %188 = arith.subf %180, %187 : vector<16x32xf32>
    %189 = arith.mulf %188, %188 : vector<16x32xf32>
    %cst_38 = arith.constant dense<0.000000e+00> : vector<16xf32>
    %190 = vector.multi_reduction <add>, %189, %cst_38 [1] : vector<16x32xf32> to vector<16xf32>
    %191 = vector.shape_cast %190 : vector<16xf32> to vector<16x1xf32>
    %cst_39 = arith.constant 3.200000e+01 : f32
    %192 = vector.broadcast %cst_39 : f32 to vector<16x1xf32>
    %193 = arith.divf %191, %192 : vector<16x1xf32>
    %194 = vector.broadcast %186 : vector<16x1xf32> to vector<16x32xf32>
    %195 = arith.subf %180, %194 : vector<16x32xf32>
    %cst_40 = arith.constant 9.99999997E-7 : f32
    %196 = vector.broadcast %cst_40 : f32 to vector<16x1xf32>
    %197 = arith.addf %193, %196 : vector<16x1xf32>
    %198 = math.rsqrt %197 : vector<16x1xf32>
    %199 = vector.broadcast %198 : vector<16x1xf32> to vector<16x32xf32>
    %200 = arith.mulf %195, %199 : vector<16x32xf32>
    %201 = vector.broadcast %181 : vector<1x32xf32> to vector<16x32xf32>
    %202 = arith.mulf %200, %201 : vector<16x32xf32>
    %203 = vector.broadcast %182 : vector<1x32xf32> to vector<16x32xf32>
    %204 = arith.addf %202, %203 : vector<16x32xf32>
    %c208 = arith.constant 208 : index
    %c0_41 = arith.constant 0 : index
    %205 = vector.load %arg2[%c208, %c0_41] : memref<600x128xf32, #tpu.memory_space<vmem>>, vector<32x64xf32>
    %cst_42 = arith.constant dense<0.000000e+00> : vector<16x64xf32>
    %206 = tpu.matmul %204, %205, %cst_42 {dimension_numbers = #tpu.dot_dimension_numbers<[1], [0], [0], [1], [0, 0, 1, 1], [], []>} : vector<16x32xf32>, vector<32x64xf32>, vector<16x64xf32> -> vector<16x64xf32>
    %c240 = arith.constant 240 : index
    %c0_43 = arith.constant 0 : index
    %207 = vector.load %arg2[%c240, %c0_43] : memref<600x128xf32, #tpu.memory_space<vmem>>, vector<1x64xf32>
    %208 = vector.broadcast %207 : vector<1x64xf32> to vector<16x64xf32>
    %209 = arith.addf %206, %208 : vector<16x64xf32>
    %210 = arith.mulf %209, %209 : vector<16x64xf32>
    %211 = arith.mulf %209, %210 : vector<16x64xf32>
    %cst_44 = arith.constant 4.471500e-02 : f32
    %212 = vector.broadcast %cst_44 : f32 to vector<16x64xf32>
    %213 = arith.mulf %212, %211 : vector<16x64xf32>
    %214 = arith.addf %209, %213 : vector<16x64xf32>
    %cst_45 = arith.constant 0.797884583 : f32
    %215 = vector.broadcast %cst_45 : f32 to vector<16x64xf32>
    %216 = arith.mulf %215, %214 : vector<16x64xf32>
    %217 = math.tanh %216 : vector<16x64xf32>
    %cst_46 = arith.constant 1.000000e+00 : f32
    %218 = vector.broadcast %cst_46 : f32 to vector<16x64xf32>
    %219 = arith.addf %218, %217 : vector<16x64xf32>
    %cst_47 = arith.constant 5.000000e-01 : f32
    %220 = vector.broadcast %cst_47 : f32 to vector<16x64xf32>
    %221 = arith.mulf %220, %219 : vector<16x64xf32>
    %222 = arith.mulf %209, %221 : vector<16x64xf32>
    %c248 = arith.constant 248 : index
    %c0_48 = arith.constant 0 : index
    %223 = vector.load %arg2[%c248, %c0_48] : memref<600x128xf32, #tpu.memory_space<vmem>>, vector<64x32xf32>
    %cst_49 = arith.constant dense<0.000000e+00> : vector<16x32xf32>
    %224 = tpu.matmul %222, %223, %cst_49 {dimension_numbers = #tpu.dot_dimension_numbers<[1], [0], [0], [1], [0, 0, 1, 1], [], []>} : vector<16x64xf32>, vector<64x32xf32>, vector<16x32xf32> -> vector<16x32xf32>
    %c312 = arith.constant 312 : index
    %c0_50 = arith.constant 0 : index
    %225 = vector.load %arg2[%c312, %c0_50] : memref<600x128xf32, #tpu.memory_space<vmem>>, vector<1x32xf32>
    %226 = vector.broadcast %225 : vector<1x32xf32> to vector<16x32xf32>
    %227 = arith.addf %224, %226 : vector<16x32xf32>
    %228 = arith.addf %180, %227 : vector<16x32xf32>
    %c320 = arith.constant 320 : index
    %c0_51 = arith.constant 0 : index
    %229 = vector.load %arg2[%c320, %c0_51] : memref<600x128xf32, #tpu.memory_space<vmem>>, vector<1x32xf32>
    %c328 = arith.constant 328 : index
    %c0_52 = arith.constant 0 : index
    %230 = vector.load %arg2[%c328, %c0_52] : memref<600x128xf32, #tpu.memory_space<vmem>>, vector<1x32xf32>
    %cst_53 = arith.constant dense<0.000000e+00> : vector<16xf32>
    %231 = vector.multi_reduction <add>, %228, %cst_53 [1] : vector<16x32xf32> to vector<16xf32>
    %232 = vector.shape_cast %231 : vector<16xf32> to vector<16x1xf32>
    %cst_54 = arith.constant 3.200000e+01 : f32
    %233 = vector.broadcast %cst_54 : f32 to vector<16x1xf32>
    %234 = arith.divf %232, %233 : vector<16x1xf32>
    %235 = vector.broadcast %234 : vector<16x1xf32> to vector<16x32xf32>
    %236 = arith.subf %228, %235 : vector<16x32xf32>
    %237 = arith.mulf %236, %236 : vector<16x32xf32>
    %cst_55 = arith.constant dense<0.000000e+00> : vector<16xf32>
    %238 = vector.multi_reduction <add>, %237, %cst_55 [1] : vector<16x32xf32> to vector<16xf32>
    %239 = vector.shape_cast %238 : vector<16xf32> to vector<16x1xf32>
    %cst_56 = arith.constant 3.200000e+01 : f32
    %240 = vector.broadcast %cst_56 : f32 to vector<16x1xf32>
    %241 = arith.divf %239, %240 : vector<16x1xf32>
    %242 = vector.broadcast %234 : vector<16x1xf32> to vector<16x32xf32>
    %243 = arith.subf %228, %242 : vector<16x32xf32>
    %cst_57 = arith.constant 9.99999997E-7 : f32
    %244 = vector.broadcast %cst_57 : f32 to vector<16x1xf32>
    %245 = arith.addf %241, %244 : vector<16x1xf32>
    %246 = math.rsqrt %245 : vector<16x1xf32>
    %247 = vector.broadcast %246 : vector<16x1xf32> to vector<16x32xf32>
    %248 = arith.mulf %243, %247 : vector<16x32xf32>
    %249 = vector.broadcast %229 : vector<1x32xf32> to vector<16x32xf32>
    %250 = arith.mulf %248, %249 : vector<16x32xf32>
    %251 = vector.broadcast %230 : vector<1x32xf32> to vector<16x32xf32>
    %252 = arith.addf %250, %251 : vector<16x32xf32>
    %c336 = arith.constant 336 : index
    %c0_58 = arith.constant 0 : index
    %253 = vector.load %arg2[%c336, %c0_58] : memref<600x128xf32, #tpu.memory_space<vmem>>, vector<32x96xf32>
    %cst_59 = arith.constant dense<0.000000e+00> : vector<16x96xf32>
    %254 = tpu.matmul %252, %253, %cst_59 {dimension_numbers = #tpu.dot_dimension_numbers<[1], [0], [0], [1], [0, 0, 1, 1], [], []>} : vector<16x32xf32>, vector<32x96xf32>, vector<16x96xf32> -> vector<16x96xf32>
    %c368 = arith.constant 368 : index
    %c0_60 = arith.constant 0 : index
    %255 = vector.load %arg2[%c368, %c0_60] : memref<600x128xf32, #tpu.memory_space<vmem>>, vector<1x96xf32>
    %256 = vector.broadcast %255 : vector<1x96xf32> to vector<16x96xf32>
    %257 = arith.addf %254, %256 : vector<16x96xf32>
    %258 = vector.extract_strided_slice %257 {offsets = [0, 0], sizes = [16, 8], strides = [1, 1]} : vector<16x96xf32> to vector<16x8xf32>
    %259 = vector.shape_cast %258 : vector<16x8xf32> to vector<2x8x8xf32>
    %260 = vector.extract_strided_slice %257 {offsets = [0, 8], sizes = [16, 8], strides = [1, 1]} : vector<16x96xf32> to vector<16x8xf32>
    %261 = vector.shape_cast %260 : vector<16x8xf32> to vector<2x8x8xf32>
    %262 = vector.extract_strided_slice %257 {offsets = [0, 16], sizes = [16, 8], strides = [1, 1]} : vector<16x96xf32> to vector<16x8xf32>
    %263 = vector.shape_cast %262 : vector<16x8xf32> to vector<2x8x8xf32>
    %264 = vector.extract_strided_slice %257 {offsets = [0, 24], sizes = [16, 8], strides = [1, 1]} : vector<16x96xf32> to vector<16x8xf32>
    %265 = vector.shape_cast %264 : vector<16x8xf32> to vector<2x8x8xf32>
    %266 = vector.shape_cast %259 : vector<2x8x8xf32> to vector<1x2x8x8xf32>
    %267 = vector.shape_cast %261 : vector<2x8x8xf32> to vector<1x2x8x8xf32>
    %268 = vector.shape_cast %263 : vector<2x8x8xf32> to vector<1x2x8x8xf32>
    %269 = vector.shape_cast %265 : vector<2x8x8xf32> to vector<1x2x8x8xf32>
    %270 = tpu.concatenate %266, %267, %268, %269 in 0 : vector<1x2x8x8xf32>, vector<1x2x8x8xf32>, vector<1x2x8x8xf32>, vector<1x2x8x8xf32> -> vector<4x2x8x8xf32>
    %271 = vector.shape_cast %270 : vector<4x2x8x8xf32> to vector<8x8x8xf32>
    %272 = vector.extract_strided_slice %257 {offsets = [0, 32], sizes = [16, 8], strides = [1, 1]} : vector<16x96xf32> to vector<16x8xf32>
    %273 = vector.shape_cast %272 : vector<16x8xf32> to vector<2x8x8xf32>
    %274 = vector.extract_strided_slice %257 {offsets = [0, 40], sizes = [16, 8], strides = [1, 1]} : vector<16x96xf32> to vector<16x8xf32>
    %275 = vector.shape_cast %274 : vector<16x8xf32> to vector<2x8x8xf32>
    %276 = vector.extract_strided_slice %257 {offsets = [0, 48], sizes = [16, 8], strides = [1, 1]} : vector<16x96xf32> to vector<16x8xf32>
    %277 = vector.shape_cast %276 : vector<16x8xf32> to vector<2x8x8xf32>
    %278 = vector.extract_strided_slice %257 {offsets = [0, 56], sizes = [16, 8], strides = [1, 1]} : vector<16x96xf32> to vector<16x8xf32>
    %279 = vector.shape_cast %278 : vector<16x8xf32> to vector<2x8x8xf32>
    %280 = vector.shape_cast %273 : vector<2x8x8xf32> to vector<1x2x8x8xf32>
    %281 = vector.shape_cast %275 : vector<2x8x8xf32> to vector<1x2x8x8xf32>
    %282 = vector.shape_cast %277 : vector<2x8x8xf32> to vector<1x2x8x8xf32>
    %283 = vector.shape_cast %279 : vector<2x8x8xf32> to vector<1x2x8x8xf32>
    %284 = tpu.concatenate %280, %281, %282, %283 in 0 : vector<1x2x8x8xf32>, vector<1x2x8x8xf32>, vector<1x2x8x8xf32>, vector<1x2x8x8xf32> -> vector<4x2x8x8xf32>
    %285 = vector.shape_cast %284 : vector<4x2x8x8xf32> to vector<8x8x8xf32>
    %286 = vector.extract_strided_slice %257 {offsets = [0, 64], sizes = [16, 8], strides = [1, 1]} : vector<16x96xf32> to vector<16x8xf32>
    %287 = vector.shape_cast %286 : vector<16x8xf32> to vector<2x8x8xf32>
    %288 = vector.extract_strided_slice %257 {offsets = [0, 72], sizes = [16, 8], strides = [1, 1]} : vector<16x96xf32> to vector<16x8xf32>
    %289 = vector.shape_cast %288 : vector<16x8xf32> to vector<2x8x8xf32>
    %290 = vector.extract_strided_slice %257 {offsets = [0, 80], sizes = [16, 8], strides = [1, 1]} : vector<16x96xf32> to vector<16x8xf32>
    %291 = vector.shape_cast %290 : vector<16x8xf32> to vector<2x8x8xf32>
    %292 = vector.extract_strided_slice %257 {offsets = [0, 88], sizes = [16, 8], strides = [1, 1]} : vector<16x96xf32> to vector<16x8xf32>
    %293 = vector.shape_cast %292 : vector<16x8xf32> to vector<2x8x8xf32>
    %294 = vector.shape_cast %287 : vector<2x8x8xf32> to vector<1x2x8x8xf32>
    %295 = vector.shape_cast %289 : vector<2x8x8xf32> to vector<1x2x8x8xf32>
    %296 = vector.shape_cast %291 : vector<2x8x8xf32> to vector<1x2x8x8xf32>
    %297 = vector.shape_cast %293 : vector<2x8x8xf32> to vector<1x2x8x8xf32>
    %298 = tpu.concatenate %294, %295, %296, %297 in 0 : vector<1x2x8x8xf32>, vector<1x2x8x8xf32>, vector<1x2x8x8xf32>, vector<1x2x8x8xf32> -> vector<4x2x8x8xf32>
    %299 = vector.shape_cast %298 : vector<4x2x8x8xf32> to vector<8x8x8xf32>
    "tpu.trace_start"() <{level = 10 : i32, message = "nsd,ntd->nst"}> : () -> ()
    %cst_61 = arith.constant dense<0.000000e+00> : vector<8x8x8xf32>
    %300 = tpu.matmul %271, %285, %cst_61 {dimension_numbers = #tpu.dot_dimension_numbers<[2], [2], [1], [1], [0, 0, 0, 1, 1, 1], [0], [0]>} : vector<8x8x8xf32>, vector<8x8x8xf32>, vector<8x8x8xf32> -> vector<8x8x8xf32>
    "tpu.trace_stop"() : () -> ()
    %cst_62 = arith.constant 0.353553385 : f32
    %301 = vector.broadcast %cst_62 : f32 to vector<8x8x8xf32>
    %302 = arith.mulf %300, %301 : vector<8x8x8xf32>
    %cst_63 = arith.constant dense<0xFF800000> : vector<8x8xf32>
    %303 = vector.multi_reduction <maximumf>, %302, %cst_63 [2] : vector<8x8x8xf32> to vector<8x8xf32>
    %304 = vector.shape_cast %303 : vector<8x8xf32> to vector<8x8x1xf32>
    %305 = vector.broadcast %304 : vector<8x8x1xf32> to vector<8x8x8xf32>
    %306 = arith.subf %302, %305 : vector<8x8x8xf32>
    %307 = math.exp %306 : vector<8x8x8xf32>
    %cst_64 = arith.constant dense<0.000000e+00> : vector<8x8xf32>
    %308 = vector.multi_reduction <add>, %307, %cst_64 [2] : vector<8x8x8xf32> to vector<8x8xf32>
    %309 = vector.shape_cast %308 : vector<8x8xf32> to vector<8x8x1xf32>
    %310 = tpu.reciprocal %309 {approx = true} : vector<8x8x1xf32> -> vector<8x8x1xf32>
    %311 = vector.broadcast %310 : vector<8x8x1xf32> to vector<8x8x8xf32>
    %312 = arith.mulf %307, %311 : vector<8x8x8xf32>
    "tpu.trace_start"() <{level = 10 : i32, message = "nst,ntd->nsd"}> : () -> ()
    %cst_65 = arith.constant dense<0.000000e+00> : vector<8x8x8xf32>
    %313 = tpu.matmul %312, %299, %cst_65 {dimension_numbers = #tpu.dot_dimension_numbers<[2], [1], [1], [2], [0, 0, 0, 1, 1, 2], [0], [0]>} : vector<8x8x8xf32>, vector<8x8x8xf32>, vector<8x8x8xf32> -> vector<8x8x8xf32>
    "tpu.trace_stop"() : () -> ()
    %314 = vector.shape_cast %313 : vector<8x8x8xf32> to vector<4x16x8xf32>
    %315 = vector.extract_strided_slice %314 {offsets = [0, 0, 0], sizes = [1, 16, 8], strides = [1, 1, 1]} : vector<4x16x8xf32> to vector<1x16x8xf32>
    %316 = vector.shape_cast %315 : vector<1x16x8xf32> to vector<16x8xf32>
    %317 = vector.extract_strided_slice %314 {offsets = [1, 0, 0], sizes = [1, 16, 8], strides = [1, 1, 1]} : vector<4x16x8xf32> to vector<1x16x8xf32>
    %318 = vector.shape_cast %317 : vector<1x16x8xf32> to vector<16x8xf32>
    %319 = vector.extract_strided_slice %314 {offsets = [2, 0, 0], sizes = [1, 16, 8], strides = [1, 1, 1]} : vector<4x16x8xf32> to vector<1x16x8xf32>
    %320 = vector.shape_cast %319 : vector<1x16x8xf32> to vector<16x8xf32>
    %321 = vector.extract_strided_slice %314 {offsets = [3, 0, 0], sizes = [1, 16, 8], strides = [1, 1, 1]} : vector<4x16x8xf32> to vector<1x16x8xf32>
    %322 = vector.shape_cast %321 : vector<1x16x8xf32> to vector<16x8xf32>
    %323 = tpu.concatenate %316, %318, %320, %322 in 1 : vector<16x8xf32>, vector<16x8xf32>, vector<16x8xf32>, vector<16x8xf32> -> vector<16x32xf32>
    %c376 = arith.constant 376 : index
    %c0_66 = arith.constant 0 : index
    %324 = vector.load %arg2[%c376, %c0_66] : memref<600x128xf32, #tpu.memory_space<vmem>>, vector<32x32xf32>
    %cst_67 = arith.constant dense<0.000000e+00> : vector<16x32xf32>
    %325 = tpu.matmul %323, %324, %cst_67 {dimension_numbers = #tpu.dot_dimension_numbers<[1], [0], [0], [1], [0, 0, 1, 1], [], []>} : vector<16x32xf32>, vector<32x32xf32>, vector<16x32xf32> -> vector<16x32xf32>
    %c408 = arith.constant 408 : index
    %c0_68 = arith.constant 0 : index
    %326 = vector.load %arg2[%c408, %c0_68] : memref<600x128xf32, #tpu.memory_space<vmem>>, vector<1x32xf32>
    %327 = vector.broadcast %326 : vector<1x32xf32> to vector<16x32xf32>
    %328 = arith.addf %325, %327 : vector<16x32xf32>
    %329 = arith.addf %228, %328 : vector<16x32xf32>
    %c416 = arith.constant 416 : index
    %c0_69 = arith.constant 0 : index
    %330 = vector.load %arg2[%c416, %c0_69] : memref<600x128xf32, #tpu.memory_space<vmem>>, vector<1x32xf32>
    %c424 = arith.constant 424 : index
    %c0_70 = arith.constant 0 : index
    %331 = vector.load %arg2[%c424, %c0_70] : memref<600x128xf32, #tpu.memory_space<vmem>>, vector<1x32xf32>
    %cst_71 = arith.constant dense<0.000000e+00> : vector<16xf32>
    %332 = vector.multi_reduction <add>, %329, %cst_71 [1] : vector<16x32xf32> to vector<16xf32>
    %333 = vector.shape_cast %332 : vector<16xf32> to vector<16x1xf32>
    %cst_72 = arith.constant 3.200000e+01 : f32
    %334 = vector.broadcast %cst_72 : f32 to vector<16x1xf32>
    %335 = arith.divf %333, %334 : vector<16x1xf32>
    %336 = vector.broadcast %335 : vector<16x1xf32> to vector<16x32xf32>
    %337 = arith.subf %329, %336 : vector<16x32xf32>
    %338 = arith.mulf %337, %337 : vector<16x32xf32>
    %cst_73 = arith.constant dense<0.000000e+00> : vector<16xf32>
    %339 = vector.multi_reduction <add>, %338, %cst_73 [1] : vector<16x32xf32> to vector<16xf32>
    %340 = vector.shape_cast %339 : vector<16xf32> to vector<16x1xf32>
    %cst_74 = arith.constant 3.200000e+01 : f32
    %341 = vector.broadcast %cst_74 : f32 to vector<16x1xf32>
    %342 = arith.divf %340, %341 : vector<16x1xf32>
    %343 = vector.broadcast %335 : vector<16x1xf32> to vector<16x32xf32>
    %344 = arith.subf %329, %343 : vector<16x32xf32>
    %cst_75 = arith.constant 9.99999997E-7 : f32
    %345 = vector.broadcast %cst_75 : f32 to vector<16x1xf32>
    %346 = arith.addf %342, %345 : vector<16x1xf32>
    %347 = math.rsqrt %346 : vector<16x1xf32>
    %348 = vector.broadcast %347 : vector<16x1xf32> to vector<16x32xf32>
    %349 = arith.mulf %344, %348 : vector<16x32xf32>
    %350 = vector.broadcast %330 : vector<1x32xf32> to vector<16x32xf32>
    %351 = arith.mulf %349, %350 : vector<16x32xf32>
    %352 = vector.broadcast %331 : vector<1x32xf32> to vector<16x32xf32>
    %353 = arith.addf %351, %352 : vector<16x32xf32>
    %c432 = arith.constant 432 : index
    %c0_76 = arith.constant 0 : index
    %354 = vector.load %arg2[%c432, %c0_76] : memref<600x128xf32, #tpu.memory_space<vmem>>, vector<32x64xf32>
    %cst_77 = arith.constant dense<0.000000e+00> : vector<16x64xf32>
    %355 = tpu.matmul %353, %354, %cst_77 {dimension_numbers = #tpu.dot_dimension_numbers<[1], [0], [0], [1], [0, 0, 1, 1], [], []>} : vector<16x32xf32>, vector<32x64xf32>, vector<16x64xf32> -> vector<16x64xf32>
    %c464 = arith.constant 464 : index
    %c0_78 = arith.constant 0 : index
    %356 = vector.load %arg2[%c464, %c0_78] : memref<600x128xf32, #tpu.memory_space<vmem>>, vector<1x64xf32>
    %357 = vector.broadcast %356 : vector<1x64xf32> to vector<16x64xf32>
    %358 = arith.addf %355, %357 : vector<16x64xf32>
    %359 = arith.mulf %358, %358 : vector<16x64xf32>
    %360 = arith.mulf %358, %359 : vector<16x64xf32>
    %cst_79 = arith.constant 4.471500e-02 : f32
    %361 = vector.broadcast %cst_79 : f32 to vector<16x64xf32>
    %362 = arith.mulf %361, %360 : vector<16x64xf32>
    %363 = arith.addf %358, %362 : vector<16x64xf32>
    %cst_80 = arith.constant 0.797884583 : f32
    %364 = vector.broadcast %cst_80 : f32 to vector<16x64xf32>
    %365 = arith.mulf %364, %363 : vector<16x64xf32>
    %366 = math.tanh %365 : vector<16x64xf32>
    %cst_81 = arith.constant 1.000000e+00 : f32
    %367 = vector.broadcast %cst_81 : f32 to vector<16x64xf32>
    %368 = arith.addf %367, %366 : vector<16x64xf32>
    %cst_82 = arith.constant 5.000000e-01 : f32
    %369 = vector.broadcast %cst_82 : f32 to vector<16x64xf32>
    %370 = arith.mulf %369, %368 : vector<16x64xf32>
    %371 = arith.mulf %358, %370 : vector<16x64xf32>
    %c472 = arith.constant 472 : index
    %c0_83 = arith.constant 0 : index
    %372 = vector.load %arg2[%c472, %c0_83] : memref<600x128xf32, #tpu.memory_space<vmem>>, vector<64x32xf32>
    %cst_84 = arith.constant dense<0.000000e+00> : vector<16x32xf32>
    %373 = tpu.matmul %371, %372, %cst_84 {dimension_numbers = #tpu.dot_dimension_numbers<[1], [0], [0], [1], [0, 0, 1, 1], [], []>} : vector<16x64xf32>, vector<64x32xf32>, vector<16x32xf32> -> vector<16x32xf32>
    %c536 = arith.constant 536 : index
    %c0_85 = arith.constant 0 : index
    %374 = vector.load %arg2[%c536, %c0_85] : memref<600x128xf32, #tpu.memory_space<vmem>>, vector<1x32xf32>
    %375 = vector.broadcast %374 : vector<1x32xf32> to vector<16x32xf32>
    %376 = arith.addf %373, %375 : vector<16x32xf32>
    %377 = arith.addf %329, %376 : vector<16x32xf32>
    %378 = vector.shape_cast %377 : vector<16x32xf32> to vector<2x8x32xf32>
    %379 = vector.extract_strided_slice %378 {offsets = [0, 0, 0], sizes = [2, 1, 32], strides = [1, 1, 1]} : vector<2x8x32xf32> to vector<2x1x32xf32>
    %380 = vector.shape_cast %379 : vector<2x1x32xf32> to vector<2x32xf32>
    %c544 = arith.constant 544 : index
    %c0_86 = arith.constant 0 : index
    %381 = vector.load %arg2[%c544, %c0_86] : memref<600x128xf32, #tpu.memory_space<vmem>>, vector<1x32xf32>
    %c552 = arith.constant 552 : index
    %c0_87 = arith.constant 0 : index
    %382 = vector.load %arg2[%c552, %c0_87] : memref<600x128xf32, #tpu.memory_space<vmem>>, vector<1x32xf32>
    %cst_88 = arith.constant dense<0.000000e+00> : vector<2xf32>
    %383 = vector.multi_reduction <add>, %380, %cst_88 [1] : vector<2x32xf32> to vector<2xf32>
    %384 = vector.shape_cast %383 : vector<2xf32> to vector<2x1xf32>
    %cst_89 = arith.constant 3.200000e+01 : f32
    %385 = vector.broadcast %cst_89 : f32 to vector<2x1xf32>
    %386 = arith.divf %384, %385 : vector<2x1xf32>
    %387 = vector.broadcast %386 : vector<2x1xf32> to vector<2x32xf32>
    %388 = arith.subf %380, %387 : vector<2x32xf32>
    %389 = arith.mulf %388, %388 : vector<2x32xf32>
    %cst_90 = arith.constant dense<0.000000e+00> : vector<2xf32>
    %390 = vector.multi_reduction <add>, %389, %cst_90 [1] : vector<2x32xf32> to vector<2xf32>
    %391 = vector.shape_cast %390 : vector<2xf32> to vector<2x1xf32>
    %cst_91 = arith.constant 3.200000e+01 : f32
    %392 = vector.broadcast %cst_91 : f32 to vector<2x1xf32>
    %393 = arith.divf %391, %392 : vector<2x1xf32>
    %394 = vector.broadcast %386 : vector<2x1xf32> to vector<2x32xf32>
    %395 = arith.subf %380, %394 : vector<2x32xf32>
    %cst_92 = arith.constant 9.99999997E-7 : f32
    %396 = vector.broadcast %cst_92 : f32 to vector<2x1xf32>
    %397 = arith.addf %393, %396 : vector<2x1xf32>
    %398 = math.rsqrt %397 : vector<2x1xf32>
    %399 = vector.broadcast %398 : vector<2x1xf32> to vector<2x32xf32>
    %400 = arith.mulf %395, %399 : vector<2x32xf32>
    %401 = vector.broadcast %381 : vector<1x32xf32> to vector<2x32xf32>
    %402 = arith.mulf %400, %401 : vector<2x32xf32>
    %403 = vector.broadcast %382 : vector<1x32xf32> to vector<2x32xf32>
    %404 = arith.addf %402, %403 : vector<2x32xf32>
    %c560 = arith.constant 560 : index
    %c0_93 = arith.constant 0 : index
    %405 = vector.load %arg2[%c560, %c0_93] : memref<600x128xf32, #tpu.memory_space<vmem>>, vector<32x128xf32>
    %cst_94 = arith.constant dense<0.000000e+00> : vector<2x128xf32>
    %406 = tpu.matmul %404, %405, %cst_94 {dimension_numbers = #tpu.dot_dimension_numbers<[1], [0], [0], [1], [0, 0, 1, 1], [], []>} : vector<2x32xf32>, vector<32x128xf32>, vector<2x128xf32> -> vector<2x128xf32>
    %c592 = arith.constant 592 : index
    %c0_95 = arith.constant 0 : index
    %407 = vector.load %arg2[%c592, %c0_95] : memref<600x128xf32, #tpu.memory_space<vmem>>, vector<1x128xf32>
    %408 = vector.broadcast %407 : vector<1x128xf32> to vector<2x128xf32>
    %409 = arith.addf %406, %408 : vector<2x128xf32>
    %c0_96 = arith.constant 0 : index
    %c0_97 = arith.constant 0 : index
    %410 = vector.load %arg3[%c0_96, %c0_97] : memref<2x128xf32, #tpu.memory_space<vmem>>, vector<2x128xf32>
    tpu.vector_store %arg3[%c0_96, %c0_97], %409 {strides = array<i32>} : memref<2x128xf32, #tpu.memory_space<vmem>>, vector<2x128xf32>,
    return
  }
}

</mosaic_0001>

<bundles_post_ra>
// kernel: transformer_forward.1
= control target key start
LH: loop header
LB: loop body
LE: loop exit
PB: predicated region body
PF: predicated region fallthrough
CT: control target
= control target key end

     0   :  { %8 = vsyncpa [#allocation3], 0  ;;  %s2714_s0 = inlined_call_operand.vmem [shape: s32[2,8,1], index: 0, kind: input, shape index: {}]   ;;  %s2715_s1 = inlined_call_operand.vmem [shape: f32[2,8,2], index: 1, kind: input, shape index: {}]   ;;  %s2716_s2 = inlined_call_operand.hbm [shape: f32[600,128], index: 2, kind: input, shape index: {}]   ;;  %s2717_s3 = inlined_call_operand.hbm [shape: f32[2,128], index: 3, kind: output, shape index: {}]  }
   0x1   :  { %9 = vsyncpa [#allocation4], 0  ;;  %s18_s14 = sshll.u32 %s2716_s2, 4  ;;  %s2292_s15 = smov [#allocation2]   ;;  %s19_s14 = int_to_ptr.hbm [resolvable:$true] %s18_s14 }
   0x2   :  { %s20_s16 = sshll.u32 %s2292_s15, 4  ;;  %s2293_s17 = smov 128   ;;  %s21_s16 = int_to_ptr.vmem [resolvable:$true] %s20_s16 }
   0x3   :  { %s2294_s18 = smov 8  }
   0x4   :  { %26 = dma.hbm_to_vmem [thread:$0]  %s19_s14, 9600, %s21_s16, [#allocation3], %s2293_s17, %s2293_s17, %s2294_s18  }
   0x5   :  { %2288 = dma.done.wait [#allocation3], 9600  }
   0x6   :  { %2289 = vsyncadd [#allocation3], 4294957696  ;;  %v2295_v0 = vmov 0   ;;  %v118_v1 = vld [vmem:[%s2715_s1] sm:$0xff]  ;;  %v119_v2 = vld [vmem:[%s2715_s1 + $0x8] sm:$0xff]  ;;  %v2296_v3 = vmov 1  }
   0x7   :  { %2067 = vset.pattern.permute.xlu0 %v2295_v0  ;;  %2069 = vset.pattern.permute.xlu1 %v2295_v0  ;;  %v176_v4 = vld [vmem:[#allocation2 + $0x50] sm:$0xff]  ;;  %v175_v5 = vld [vmem:[#allocation2 + $0x48] sm:$0xff]  ;;  %v174_v7 = vld [vmem:[#allocation2 + $0x40] sm:$0xff]  ;;  %v2297_v8 = vmov 0.0   ;;  %vm179_vm8 = vcmask 523264   ;;  %vm213_vm9 = vcmask 261120  }
   0x8   :  { %2071 = vset.pattern.permute.xlu2 %v2295_v0  ;;  %123 = vperm.xlu0 %2067, %v118_v1   ;;  %v33_v6 = vld [vmem:[%s2714_s0 + $0x8] sm:$0xff]  ;;  %v173_v11 = vld [vmem:[#allocation2 + $0x38] sm:$0xff]  ;;  %v172_v13 = vld [vmem:[#allocation2 + $0x30] sm:$0xff]  ;;  %s2300_s25 = smov 120   ;;  %s2301_s26 = smov 104  }
   0x9   :  { %128 = vperm.xlu1 %2069, %v119_v2   ;;  %194 = vmatpush.msra.mxu0 %v176_v4  ;;  %vm35_vm0 = vcmp.eq.s32.totalorder %v33_v6, 0  ;;  %vm56_vm1 = vcmp.eq.s32.totalorder %v33_v6, 1  ;;  %v171_v14 = vld [vmem:[#allocation2 + $0x28] sm:$0xff]  ;;  %v170_v15 = vld [vmem:[#allocation2 + $0x20] sm:$0xff]  ;;  %v169_v16 = vld [vmem:[#allocation2 + $0x18] sm:$0xff]  ;;  %vm77_vm6 = vcmp.eq.s32.totalorder %v33_v6, 2 }
   0xa   :  { %v1978_v9 = vsel %vm35_vm0, 1.0, %v2297_v8  ;;  %v1980_v10 = vsel %vm56_vm1, 1.0, %v2297_v8  ;;  %v120_v19 = vld [vmem:[#allocation2 + $0x8] sm:$0x3]  ;;  %v32_v20 = vld [vmem:[%s2714_s0] sm:$0xff]  ;;  %vm98_vm7 = vcmp.eq.s32.totalorder %v33_v6, 3 }
   0xb   :  { %195 = vmatpush.msra.mxu0 %v175_v5  ;;  %v2083_v12 = vpack.i.bf16 %v1980_v10, %v1978_v9  ;;  %v131_v21 = vperm.slane %v120_v19, 0  ;;  %v142_v22 = vperm.slane %v120_v19, 1  ;;  %vm34_vm2 = vcmp.eq.s32.totalorder %v32_v20, 0  ;;  %v2123_v30 = vld [vmem:[#allocation2 + $0x10] ss:$0 sm:$0xff]  ;;  %s2299_s0 = smov 112  }
   0xc   :  { %vm55_vm3 = vcmp.eq.s32.totalorder %v32_v20, 1  ;;  %v1977_v23 = vsel %vm34_vm2, 1.0, %v2297_v8  ;;  %vm76_vm4 = vcmp.eq.s32.totalorder %v32_v20, 2  ;;  %vm97_vm5 = vcmp.eq.s32.totalorder %v32_v20, 3  ;;  %v31_v62 = vld [vmem:[#allocation2] sm:$0xf] }
   0xd   :  { %196 = vmatpush.msra.mxu0 %v174_v7  ;;  %v1979_v24 = vsel %vm55_vm3, 1.0, %v2297_v8  ;;  %v1981_v37 = vsel %vm76_vm4, 1.0, %v2297_v8  ;;  %v1983_v38 = vsel %vm97_vm5, 1.0, %v2297_v8  ;;  %v1982_v44 = vsel %vm77_vm6, 1.0, %v2297_v8  ;;  %s2302_s27 = smov 96   ;;  %s2303_s28 = smov 64  }
   0xe   :  { %v2072_v26 = vpack.i.bf16 %v1979_v24, %v1977_v23  ;;  %v2077_v41 = vpack.i.bf16 %v1983_v38, %v1981_v37  ;;  %v1984_v45 = vsel %vm98_vm7, 1.0, %v2297_v8  ;;  %v92_v7 = vperm.slane %v31_v62, 2  ;;  %s2304_s29 = smov 24   ;;  %s2305_s30 = smov 16  }
   0xf   :  { %197 = vmatpush.msra.mxu0 %v173_v11  ;;  %v2088_v50 = vpack.i.bf16 %v1984_v45, %v1982_v44  ;;  %v2298_v37 = vmov 32.0   ;;  %vm322_vm1 = vcmask 64512   ;;  %vm859_vm2 = vcmask 130048   ;;  %s2306_s4 = smov [#allocation5]   ;;  %s1967_s8 = sshll.u32 %s2717_s3, 4  ;;  %s1968_s8 = int_to_ptr.hbm [resolvable:$true] %s1967_s8 }
  0x10   :  { %2068 = vset.pattern.permute.xlu0 %v2296_v3  ;;  %2073 = vperm.xlu2 %2071, %v2072_v26   ;;  %vm862_vm3 = vcmask 195584   ;;  %s1965_s5 = sshll.u32 %s2306_s4, 4  ;;  %s1966_s5 = int_to_ptr.vmem [resolvable:$true] %s1965_s5 }
  0x11   :  { %2070 = vset.pattern.permute.xlu1 %v2296_v3  ;;  %135 = vperm.xlu0 %2068, %v118_v1   ;;  %v71_v3 = vperm.slane %v31_v62, 1 }
  0x12   :  { %139 = vperm.xlu1 %2070, %v119_v2   ;;  %198 = vmatpush.msra.mxu0 %v172_v13  ;;  %v50_v2 = vperm.slane %v31_v62, 0 }
  0x14   :  { %199 = vmatpush.msra.mxu0 %v171_v14  ;;  %v113_v14 = vperm.slane %v31_v62, 3 }
  0x16   :  { %200 = vmatpush.msra.mxu0 %v170_v15 }
  0x18   :  { %201 = vmatpush.msra.mxu0 %v169_v16  ;;  %2078 = vperm.xlu2 %2071, %v2077_v41  }
  0x1a   :  { %2082 = vset.pattern.permute.xlu1 %v2295_v0 }
  0x1b   :  { %2084 = vperm.xlu1 %2082, %v2083_v12  }
  0x20   :  { %2089 = vperm.xlu2 %2071, %v2088_v50  }
  0x6a   :  { %v2074_v61 = vpop.permute.xlu2 %2073 }
  0x6b   :  { %v2076_v0 = vunpack.i.h.bf16 %v2074_v61  ;;  %v2075_v1 = vunpack.i.l.bf16 %v2074_v61 }
  0x6d   :  { %v51_v4 = vmul.f32 %v2075_v1, %v50_v2  ;;  %v72_v5 = vmul.f32 %v2076_v0, %v71_v3 }
  0x6f   :  { %v74_v11 = vadd.f32 %v72_v5, %v51_v4 }
  0x72   :  { %v2079_v63 = vpop.permute.xlu2 %2078 }
  0x73   :  { %v2080_v6 = vunpack.i.l.bf16 %v2079_v63  ;;  %v2081_v12 = vunpack.i.h.bf16 %v2079_v63 }
  0x75   :  { %v93_v13 = vmul.f32 %v2080_v6, %v92_v7  ;;  %v114_v19 = vmul.f32 %v2081_v12, %v113_v14  ;;  %v2126_v12 = vld [vmem:[#allocation2 + $0x68] ss:$0 sm:$0xff] }
  0x7a   :  { %v124_v17 = vpop.permute.xlu0 %123  ;;  %v2090_v15 = vpop.permute.xlu2 %2089 }
  0x7b   :  { %v129_v18 = vpop.permute.xlu1 %128  ;;  %v132_v29 = vmul.f32 %v131_v21, %v124_v17  ;;  %v2091_v20 = vunpack.i.l.bf16 %v2090_v15  ;;  %v2092_v24 = vunpack.i.h.bf16 %v2090_v15 }
  0x7c   :  { %v133_v25 = vmul.f32 %v131_v21, %v129_v18  ;;  %v95_v18 = vadd.f32 %v93_v13, %v74_v11  ;;  %v2124_v21 = vld [vmem:[#allocation2 + $0x58] ss:$0 sm:$0xff] }
  0x7e   :  { %v116_v26 = vadd.f32 %v114_v19, %v95_v18 }
  0x83   :  { %v136_v27 = vpop.permute.xlu0 %135 }
  0x84   :  { %v140_v28 = vpop.permute.xlu1 %139  ;;  %v143_v31 = vmul.f32 %v142_v22, %v136_v27 }
  0x85   :  { %v144_v32 = vmul.f32 %v142_v22, %v140_v28 }
  0x86   :  { %v145_v33 = vadd.f32 %v143_v31, %v132_v29 }
  0x87   :  { %v146_v34 = vadd.f32 %v144_v32, %v133_v25  ;;  %v94_v25 = vmul.f32 %v2091_v20, %v92_v7 }
  0x88   :  { %v149_v35 = vadd.f32 %v2123_v30, %v145_v33 }
  0x89   :  { %v150_v36 = vadd.f32 %v2123_v30, %v146_v34  ;;  %v115_v30 = vmul.f32 %v2092_v24, %v113_v14 }
  0x8a   :  { %v151_v39 = vmul.f32 %v149_v35, %v149_v35 }
  0x8b   :  { %v152_v40 = vmul.f32 %v150_v36, %v150_v36 }
  0x8c   :  { %v153_v42 = vmul.f32 %v151_v39, %v149_v35 }
  0x8d   :  { %v154_v43 = vmul.f32 %v152_v40, %v150_v36  ;;  %v2085_v8 = vpop.permute.xlu1 %2084 }
  0x8e   :  { %v155_v46 = vmul.f32 0.044715, %v153_v42  ;;  %v2087_v9 = vunpack.i.h.bf16 %v2085_v8  ;;  %v2086_v10 = vunpack.i.l.bf16 %v2085_v8  ;;  %v2125_v8 = vld [vmem:[#allocation2 + $0x60] ss:$0 sm:$0xff] }
  0x8f   :  { %v156_v47 = vmul.f32 0.044715, %v154_v43 }
  0x90   :  { %v157_v48 = vadd.f32 %v155_v46, %v149_v35  ;;  %v52_v16 = vmul.f32 %v2086_v10, %v50_v2  ;;  %v73_v17 = vmul.f32 %v2087_v9, %v71_v3 }
  0x91   :  { %v158_v49 = vadd.f32 %v156_v47, %v150_v36 }
  0x92   :  { %v159_v51 = vmul.f32 0.7978846, %v157_v48  ;;  %v75_v22 = vadd.f32 %v73_v17, %v52_v16 }
  0x93   :  { %v160_v52 = vmul.f32 0.7978846, %v158_v49 }
  0x94   :  { %2144 = vtanh.f32 %v159_v51  ;;  %v96_v29 = vadd.f32 %v94_v25, %v75_v22  ;;  %v2127_v22 = vld [vmem:[#allocation2 + $0x90] ss:$0 sm:$0xff] }
  0x95   :  { %2146 = vtanh.f32 %v160_v52 }
  0x96   :  { %v117_v33 = vadd.f32 %v115_v30, %v96_v29  ;;  %2148 = vrcp.f32 %v2298_v37 }
  0x9a   :  { %v2145_v53 = vpop.eup %2144 }
  0x9b   :  { %v163_v54 = vadd.f32 1.0, %v2145_v53  ;;  %v2147_v55 = vpop.eup %2146 }
  0x9c   :  { %v164_v58 = vadd.f32 1.0, %v2147_v55  ;;  %v2149_v38 = vpop.eup %2148  ;;  %v273_v55 = vld [vmem:[#allocation2 + $0x80] sm:$0xff] }
  0x9d   :  { %v165_v56 = vmul.f32 0.5, %v163_v54  ;;  %v221_v39 = vmul.f32 32.0, %v2149_v38  ;;  %vm225_vm10 = vweird.f32 %v2149_v38  ;;  %v274_v54 = vld [vmem:[#allocation2 + $0x88] sm:$0xff] }
  0x9e   :  { %v166_v59 = vmul.f32 0.5, %v164_v58  ;;  %295 = vmatpush.msra.mxu1 %v274_v54 }
  0x9f   :  { %v167_v57 = vmul.f32 %v165_v56, %v149_v35  ;;  %v222_v40 = vsub.f32 1.0, %v221_v39  ;;  %v272_v56 = vld [vmem:[#allocation2 + $0x78] sm:$0xff] }
  0xa0   :  { %v168_v60 = vmul.f32 %v166_v59, %v150_v36  ;;  %296 = vmatpush.msra.mxu1 %v273_v55 }
  0xa1   :  { %1985 = vmatmul.msk.f32.vlgmr.msra.gmra.mxu0 %vm179_vm8, %v167_v57  ;;  %v223_v41 = vmul.f32 %v2149_v38, %v222_v40  ;;  %v271_v57 = vld [vmem:[#allocation2 + $0x70] sm:$0xff] }
  0xa2   :  { %297 = vmatpush.msra.mxu1 %v272_v56 }
  0xa3   :  { %v224_v42 = vadd.f32 %v2149_v38, %v223_v41 }
  0xa4   :  { %298 = vmatpush.msra.mxu1 %v271_v57 }
  0xa5   :  { %v2353_v43 = vsel %vm225_vm10, %v2149_v38, %v224_v42 }
  0xa9   :  { %1986 = vmatmul.msk.f32.gmra.mxu0 %vm179_vm8, %v168_v60 }
 0x11e   :  { %v203_v23 = vpop.f32.mrf.mxu0 }
 0x11f   :  { %v204_v27 = vadd.f32 %v2124_v21, %v203_v23 }
 0x121   :  { %v2345_v28 = vadd.f32 %v204_v27, %v116_v26 }
 0x123   :  { %v214_v31 = vsel %vm213_vm9, %v2345_v28, 0.0 }
 0x124   :  { %215 = vadd.xlane.f32.xlu0 %v214_v31 }
 0x126   :  { %v206_v32 = vpop.f32.mrf.mxu0 }
 0x127   :  { %v207_v34 = vadd.f32 %v2124_v21, %v206_v32 }
 0x129   :  { %v2349_v35 = vadd.f32 %v207_v34, %v117_v33 }
 0x12b   :  { %v217_v36 = vsel %vm213_vm9, %v2349_v35, 0.0 }
 0x12c   :  { %218 = vadd.xlane.f32.xlu1 %v217_v36 }
 0x197   :  { %v216_v44 = vpop.xlane.xlu0 %215 }
 0x198   :  { %v227_v45 = vmul.f32 %v2353_v43, %v216_v44 }
 0x19a   :  { %v229_v46 = vsub.f32 %v2345_v28, %v227_v45 }
 0x19c   :  { %v231_v47 = vmul.f32 %v229_v46, %v229_v46 }
 0x19e   :  { %v233_v48 = vsel %vm213_vm9, %v231_v47, 0.0 }
 0x19f   :  { %v219_v49 = vpop.xlane.xlu1 %218  ;;  %234 = vadd.xlane.f32.xlu2 %v233_v48 }
 0x1a0   :  { %v228_v50 = vmul.f32 %v2353_v43, %v219_v49 }
 0x1a2   :  { %v230_v51 = vsub.f32 %v2349_v35, %v228_v50 }
 0x1a4   :  { %v232_v52 = vmul.f32 %v230_v51, %v230_v51 }
 0x1a6   :  { %v236_v53 = vsel %vm213_vm9, %v232_v52, 0.0 }
 0x1a7   :  { %237 = vadd.xlane.f32.xlu2 %v236_v53 }
 0x212   :  { %v235_v58 = vpop.xlane.xlu2 %234 }
 0x213   :  { %v239_v59 = vmul.f32 %v235_v58, %v2353_v43 }
 0x215   :  { %v241_v60 = vadd.f32 1e-06, %v239_v59 }
 0x217   :  { %2150 = vrsqrt.f32 %v241_v60  ;;  %vm249_vm12 = vweird.f32 %v241_v60 }
 0x21a   :  { %v238_v61 = vpop.xlane.xlu2 %237 }
 0x21b   :  { %v240_v62 = vmul.f32 %v238_v61, %v2353_v43 }
 0x21d   :  { %v2151_v63 = vpop.eup %2150  ;;  %v242_v0 = vadd.f32 1e-06, %v240_v62 }
 0x21e   :  { %v244_v1 = vmul.f32 %v2151_v63, %v241_v60  ;;  %vm250_vm11 = vweird.f32 %v2151_v63 }
 0x21f   :  { %2152 = vrsqrt.f32 %v242_v0  ;;  %vm251_vm13 = vmor %vm249_vm12, %vm250_vm11  ;;  %vm259_vm15 = vweird.f32 %v242_v0 }
 0x220   :  { %v245_v2 = vmul.f32 %v2151_v63, %v244_v1 }
 0x222   :  { %v246_v3 = vmul.f32 0.5, %v245_v2 }
 0x224   :  { %v247_v4 = vsub.f32 1.5, %v246_v3 }
 0x225   :  { %v2153_v5 = vpop.eup %2152 }
 0x226   :  { %v248_v6 = vmul.f32 %v2151_v63, %v247_v4  ;;  %v254_v7 = vmul.f32 %v2153_v5, %v242_v0  ;;  %vm260_vm14 = vweird.f32 %v2153_v5 }
 0x227   :  { %vm261_vm0 = vmor %vm259_vm15, %vm260_vm14 }
 0x228   :  { %v252_v9 = vsel %vm251_vm13, %v2151_v63, %v248_v6  ;;  %v255_v10 = vmul.f32 %v2153_v5, %v254_v7 }
 0x229   :  { %v263_v11 = vmul.f32 %v252_v9, %v229_v46 }
 0x22a   :  { %v256_v13 = vmul.f32 0.5, %v255_v10 }
 0x22b   :  { %v266_v14 = vmul.f32 %v2125_v8, %v263_v11 }
 0x22c   :  { %v257_v15 = vsub.f32 1.5, %v256_v13 }
 0x22d   :  { %v269_v16 = vadd.f32 %v2126_v12, %v266_v14 }
 0x22e   :  { %v258_v17 = vmul.f32 %v2153_v5, %v257_v15 }
 0x22f   :  { %1987 = vmatmul.msk.f32.vlgmr.msra.gmra.mxu1 %vm213_vm9, %v269_v16 }
 0x230   :  { %v262_v18 = vsel %vm261_vm0, %v2153_v5, %v258_v17 }
 0x231   :  { %v264_v19 = vmul.f32 %v262_v18, %v230_v51 }
 0x233   :  { %v267_v20 = vmul.f32 %v2125_v8, %v264_v19 }
 0x235   :  { %v270_v21 = vadd.f32 %v2126_v12, %v267_v20 }
 0x237   :  { %1988 = vmatmul.msk.f32.gmra.mxu1 %vm213_vm9, %v270_v21 }
 0x2ac   :  { %v300_v23 = vpop.f32.mrf.mxu1 }
 0x2ad   :  { %v2365_v24 = vadd.f32 %v2127_v22, %v300_v23 }
 0x2af   :  { %312 = vrot.lane.b32.xlu1 %v2365_v24, %s2299_s0  ;;  %308 = vrot.lane.b32.xlu0 %v2365_v24, %s2300_s25 }
 0x2b4   :  { %v303_v25 = vpop.f32.mrf.mxu1 }
 0x2b5   :  { %v2371_v26 = vadd.f32 %v2127_v22, %v303_v25 }
 0x2b7   :  { %316 = vrot.lane.b32.xlu1 %v2365_v24, %s2301_s26  ;;  %318 = vrot.lane.b32.xlu0 %v2371_v26, %s2301_s26 }
 0x2b8   :  { %310 = vrot.lane.b32.xlu2 %v2371_v26, %s2300_s25 }
 0x2bf   :  { %314 = vrot.lane.b32.xlu0 %v2371_v26, %s2299_s0 }
 0x2c0   :  { %320 = vrot.lane.b32.xlu2 %v2365_v24, %s2302_s27 }
 0x2c7   :  { %347 = vrot.lane.b32.xlu0 %v2371_v26, %s2302_s27 }
 0x312   :  { %v2385_v27 = vpop.permute.xlu2 %310 }
 0x31a   :  { %v321_v29 = vpop.permute.xlu2 %320 }
 0x31b   :  { %1989 = vmatpush.xpose.msk.msra.mxu3 %vm322_vm1, %v321_v29 }
 0x31e   :  { %1990 = vmatmul.msk.f32.vlgmr.msra.gmra.mxu3 %vm322_vm1, %v2365_v24 }
 0x321   :  { %v2390_v30 = vpop.permute.xlu1 %312  ;;  %v2392_v31 = vpop.permute.xlu0 %308 }
 0x322   :  { %373 = vrot.lane.b32.xlu1 %v2392_v31, %s2302_s27  ;;  %425 = vrot.lane.b32.xlu2 %v2390_v30, %s2302_s27  ;;  %v2093_v13 = vpack.i.bf16 %v2392_v31, %v2365_v24 }
 0x329   :  { %v2398_v32 = vpop.permute.xlu1 %316  ;;  %v2400_v33 = vpop.permute.xlu0 %318 }
 0x32a   :  { %503 = vrot.lane.b32.xlu0 %v2400_v33, %s2302_s27  ;;  %477 = vrot.lane.b32.xlu2 %v2398_v32, %s2302_s27 }
 0x32b   :  { %399 = vrot.lane.b32.xlu1 %v2385_v27, %s2302_s27 }
 0x331   :  { %v2408_v34 = vpop.permute.xlu0 %314 }
 0x333   :  { %451 = vrot.lane.b32.xlu1 %v2408_v34, %s2302_s27 }
 0x339   :  { %v348_v36 = vpop.permute.xlu0 %347 }
 0x33a   :  { %1991 = vmatpush.xpose.msk.msrb.mxu3 %vm322_vm1, %v348_v36 }
 0x33d   :  { %1992 = vmatmul.msk.f32.vlgmr.msrb.gmra.mxu3 %vm322_vm1, %v2371_v26 }
 0x37c   :  { %v426_v37 = vpop.permute.xlu2 %425 }
 0x384   :  { %v478_v38 = vpop.permute.xlu2 %477 }
 0x385   :  { %2001 = vmatpush.xpose.msk.msrb.mxu1 %vm322_vm1, %v478_v38 }
 0x388   :  { %2002 = vmatmul.msk.f32.vlgmr.msrb.gmra.mxu1 %vm322_vm1, %v2398_v32 }
 0x394   :  { %v374_v39 = vpop.permute.xlu1 %373 }
 0x395   :  { %1993 = vmatpush.xpose.msk.msra.mxu2 %vm322_vm1, %v374_v39 }
 0x398   :  { %1994 = vmatmul.msk.f32.vlgmr.msra.gmra.mxu2 %vm322_vm1, %v2392_v31 }
 0x399   :  { %1997 = vmatpush.xpose.msk.msrb.mxu2 %vm322_vm1, %v426_v37 }
 0x39c   :  { %v504_v40 = vpop.permute.xlu0 %503 }
 0x39d   :  { %v400_v41 = vpop.permute.xlu1 %399  ;;  %2003 = vmatpush.xpose.msk.msra.mxu2 %vm322_vm1, %v504_v40 }
 0x39e   :  { %1995 = vmatpush.xpose.msk.msra.mxu3 %vm322_vm1, %v400_v41 }
 0x3a0   :  { %1998 = vmatmul.msk.f32.vlgmr.msrb.gmra.mxu2 %vm322_vm1, %v2390_v30 }
 0x3a1   :  { %v344_v42 = vpop.f32.mrf.mxu3  ;;  %1996 = vmatmul.msk.f32.vlgmr.msra.gmra.mxu3 %vm322_vm1, %v2385_v27 }
 0x3a2   :  { %v529_v44 = vmul.f32 0.35355338, %v344_v42 }
 0x3a4   :  { %v537_v45 = vsel %vm322_vm1, %v529_v44, -inf }
 0x3a5   :  { %v452_v46 = vpop.permute.xlu1 %451  ;;  %538 = vmax.xlane.f32.xlu0 %v537_v45 }
 0x3a6   :  { %1999 = vmatpush.xpose.msk.msrb.mxu3 %vm322_vm1, %v452_v46 }
 0x3a8   :  { %2004 = vmatmul.msk.f32.vlgmr.msra.gmra.mxu2 %vm322_vm1, %v2400_v33 }
 0x3a9   :  { %2000 = vmatmul.msk.f32.vlgmr.msrb.gmra.mxu3 %vm322_vm1, %v2408_v34 }
 0x3c0   :  { %v370_v47 = vpop.f32.mrf.mxu3 }
 0x3c1   :  { %v530_v48 = vmul.f32 0.35355338, %v370_v47 }
 0x3c3   :  { %v540_v49 = vsel %vm322_vm1, %v530_v48, -inf }
 0x3c4   :  { %541 = vmax.xlane.f32.xlu2 %v540_v49 }
 0x405   :  { %v500_v50 = vpop.f32.mrf.mxu1 }
 0x406   :  { %v535_v51 = vmul.f32 0.35355338, %v500_v50 }
 0x408   :  { %v555_v52 = vsel %vm322_vm1, %v535_v51, -inf }
 0x409   :  { %556 = vmax.xlane.f32.xlu1 %v555_v52 }
 0x418   :  { %v539_v53 = vpop.xlane.xlu0 %538 }
 0x419   :  { %v561_v56 = vsub.f32 %v529_v44, %v539_v53  ;;  %v2103_v53 = vpack.i.bf16 %v2398_v32, %v2371_v26  ;;  %v2098_v26 = vpack.i.bf16 %v2385_v27, %v2390_v30 }
 0x41b   :  { %v396_v54 = vpop.f32.mrf.mxu2  ;;  %v569_v58 = vmul.f32 1.442695, %v561_v56 }
 0x41c   :  { %v531_v55 = vmul.f32 0.35355338, %v396_v54 }
 0x41d   :  { %2154 = vpow2.f32 %v569_v58 }
 0x41e   :  { %v543_v57 = vsel %vm322_vm1, %v531_v55, -inf }
 0x41f   :  { %544 = vmax.xlane.f32.xlu2 %v543_v57 }
 0x423   :  { %v448_v59 = vpop.f32.mrf.mxu2  ;;  %v2439_v1 = vpop.eup %2154 }
 0x424   :  { %v422_v60 = vpop.f32.mrf.mxu3  ;;  %v533_v61 = vmul.f32 0.35355338, %v448_v59  ;;  %v585_v7 = vsel %vm322_vm1, %v2439_v1, 0.0 }
 0x425   :  { %v532_v62 = vmul.f32 0.35355338, %v422_v60 }
 0x426   :  { %v549_v63 = vsel %vm322_vm1, %v533_v61, -inf }
 0x427   :  { %v546_v0 = vsel %vm322_vm1, %v532_v62, -inf  ;;  %550 = vmax.xlane.f32.xlu1 %v549_v63 }
 0x428   :  { %547 = vmax.xlane.f32.xlu0 %v546_v0 }
 0x42b   :  { %v526_v2 = vpop.f32.mrf.mxu2 }
 0x42c   :  { %v474_v3 = vpop.f32.mrf.mxu3  ;;  %v536_v4 = vmul.f32 0.35355338, %v526_v2 }
 0x42d   :  { %v534_v5 = vmul.f32 0.35355338, %v474_v3 }
 0x42e   :  { %v558_v6 = vsel %vm322_vm1, %v536_v4, -inf }
 0x42f   :  { %v552_v8 = vsel %vm322_vm1, %v534_v5, -inf  ;;  %586 = vadd.xlane.f32.xlu1 %v585_v7 }
 0x430   :  { %553 = vmax.xlane.f32.xlu2 %v552_v8  ;;  %559 = vmax.xlane.f32.xlu0 %v558_v6 }
 0x437   :  { %v542_v9 = vpop.xlane.xlu2 %541 }
 0x438   :  { %v562_v10 = vsub.f32 %v530_v48, %v542_v9 }
 0x43a   :  { %v571_v11 = vmul.f32 1.442695, %v562_v10 }
 0x43c   :  { %2156 = vpow2.f32 %v571_v11 }
 0x442   :  { %v2445_v12 = vpop.eup %2156 }
 0x443   :  { %v588_v14 = vsel %vm322_vm1, %v2445_v12, 0.0 }
 0x444   :  { %2094 = vrot.lane.b32.xlu0 %v2093_v13, %s2303_s28  ;;  %589 = vadd.xlane.f32.xlu2 %v588_v14 }
 0x47c   :  { %v557_v15 = vpop.xlane.xlu1 %556 }
 0x47d   :  { %v567_v16 = vsub.f32 %v535_v51, %v557_v15 }
 0x47f   :  { %v581_v17 = vmul.f32 1.442695, %v567_v16 }
 0x481   :  { %2158 = vpow2.f32 %v581_v17 }
 0x487   :  { %v2452_v18 = vpop.eup %2158 }
 0x488   :  { %v603_v19 = vsel %vm322_vm1, %v2452_v18, 0.0 }
 0x489   :  { %604 = vadd.xlane.f32.xlu1 %v603_v19 }
 0x492   :  { %v545_v20 = vpop.xlane.xlu2 %544 }
 0x493   :  { %v563_v21 = vsub.f32 %v531_v55, %v545_v20 }
 0x495   :  { %v573_v22 = vmul.f32 1.442695, %v563_v21 }
 0x497   :  { %2160 = vpow2.f32 %v573_v22 }
 0x49a   :  { %v551_v23 = vpop.xlane.xlu1 %550 }
 0x49b   :  { %v548_v24 = vpop.xlane.xlu0 %547  ;;  %v565_v25 = vsub.f32 %v533_v61, %v551_v23 }
 0x49c   :  { %v564_v29 = vsub.f32 %v532_v62, %v548_v24 }
 0x49d   :  { %v2161_v31 = vpop.eup %2160  ;;  %v577_v36 = vmul.f32 1.442695, %v565_v25 }
 0x49e   :  { %v575_v37 = vmul.f32 1.442695, %v564_v29  ;;  %v591_v38 = vsel %vm322_vm1, %v2161_v31, 0.0 }
 0x49f   :  { %2162 = vpow2.f32 %v577_v36  ;;  %592 = vadd.xlane.f32.xlu0 %v591_v38  ;;  %v867_v38 = vld [vmem:[#allocation2 + $0xa8] sm:$0xff] }
 0x4a0   :  { %2164 = vpow2.f32 %v575_v37  ;;  %v868_v37 = vld [vmem:[#allocation2 + $0xb0] sm:$0xff] }
 0x4a2   :  { %v587_v50 = vpop.xlane.xlu1 %586 }
 0x4a3   :  { %v560_v39 = vpop.xlane.xlu0 %559  ;;  %v554_v40 = vpop.xlane.xlu2 %553 }
 0x4a4   :  { %v568_v41 = vsub.f32 %v536_v4, %v560_v39  ;;  %v566_v46 = vsub.f32 %v534_v5, %v554_v40  ;;  %v866_v39 = vld [vmem:[#allocation2 + $0xa0] sm:$0xff]  ;;  %v865_v40 = vld [vmem:[#allocation2 + $0x98] sm:$0xff] }
 0x4a5   :  { %v2457_v42 = vpop.eup %2162 }
 0x4a6   :  { %v2459_v44 = vpop.eup %2164  ;;  %v583_v45 = vmul.f32 1.442695, %v568_v41  ;;  %v597_v47 = vsel %vm322_vm1, %v2457_v42, 0.0  ;;  %v579_v49 = vmul.f32 1.442695, %v566_v46 }
 0x4a7   :  { %v594_v48 = vsel %vm322_vm1, %v2459_v44, 0.0  ;;  %598 = vadd.xlane.f32.xlu2 %v597_v47 }
 0x4a8   :  { %2166 = vpow2.f32 %v583_v45  ;;  %595 = vadd.xlane.f32.xlu1 %v594_v48 }
 0x4a9   :  { %2168 = vpow2.f32 %v579_v49 }
 0x4aa   :  { %2170 = vrcp.f32 %v587_v50 }
 0x4ae   :  { %v2465_v51 = vpop.eup %2166 }
 0x4af   :  { %v606_v52 = vsel %vm322_vm1, %v2465_v51, 0.0  ;;  %v2169_v54 = vpop.eup %2168 }
 0x4b0   :  { %607 = vadd.xlane.f32.xlu2 %v606_v52  ;;  %v2171_v55 = vpop.eup %2170  ;;  %v600_v59 = vsel %vm322_vm1, %v2169_v54, 0.0 }
 0x4b1   :  { %v617_v60 = vmul.f32 %v2171_v55, %v2439_v1 }
 0x4b3   :  { %2104 = vrot.lane.b32.xlu0 %v2103_v53, %s2303_s28 }
 0x4b6   :  { %v2095_v56 = vpop.permute.xlu0 %2094 }
 0x4b7   :  { %v2097_v57 = vunpack.i.h.bf16 %v2095_v56  ;;  %v2096_v58 = vunpack.i.l.bf16 %v2095_v56  ;;  %v590_v32 = vpop.xlane.xlu2 %589 }
 0x4b8   :  { %601 = vadd.xlane.f32.xlu2 %v600_v59 }
 0x4b9   :  { %646 = vmatpush.msra.mxu3 %v2096_v58  ;;  %698 = vmatpush.msra.mxu1 %v2097_v57 }
 0x4ba   :  { %2005 = vmatmul.msk.f32.vlgmr.msra.gmra.mxu3 %vm322_vm1, %v617_v60 }
 0x4bb   :  { %755 = vrot.lane.b32.xlu0 %v2408_v34, %s2303_s28 }
 0x4c1   :  { %2099 = vrot.lane.b32.xlu1 %v2098_v26, %s2303_s28 }
 0x4d0   :  { %807 = vrot.lane.b32.xlu2 %v2400_v33, %s2303_s28 }
 0x4fc   :  { %v605_v1 = vpop.xlane.xlu1 %604 }
 0x512   :  { %v593_v61 = vpop.xlane.xlu0 %592 }
 0x513   :  { %2172 = vrcp.f32 %v593_v61 }
 0x514   :  { %2174 = vrcp.f32 %v590_v32 }
 0x515   :  { %2176 = vrcp.f32 %v605_v1 }
 0x519   :  { %v2173_v62 = vpop.eup %2172 }
 0x51a   :  { %v619_v63 = vmul.f32 %v2173_v62, %v2161_v31  ;;  %v599_v0 = vpop.xlane.xlu2 %598  ;;  %v2175_v34 = vpop.eup %2174 }
 0x51b   :  { %v2177_v3 = vpop.eup %2176  ;;  %v618_v33 = vmul.f32 %v2175_v34, %v2445_v12  ;;  %v596_v6 = vpop.xlane.xlu1 %595  ;;  %2178 = vrcp.f32 %v599_v0 }
 0x51c   :  { %2007 = vmatmul.msk.f32.vlgmr.msra.gmra.mxu1 %vm322_vm1, %v619_v63  ;;  %v623_v5 = vmul.f32 %v2177_v3, %v2452_v18  ;;  %2180 = vrcp.f32 %v596_v6 }
 0x521   :  { %v2179_v9 = vpop.eup %2178 }
 0x522   :  { %v2181_v10 = vpop.eup %2180  ;;  %v621_v17 = vmul.f32 %v2179_v9, %v2457_v42 }
 0x523   :  { %v608_v2 = vpop.xlane.xlu2 %607  ;;  %v620_v16 = vmul.f32 %v2181_v10, %v2459_v44 }
 0x525   :  { %v2105_v27 = vpop.permute.xlu0 %2104 }
 0x526   :  { %v2107_v30 = vunpack.i.h.bf16 %v2105_v27  ;;  %v2106_v4 = vunpack.i.l.bf16 %v2105_v27  ;;  %v957_v27 = vld [vmem:[#allocation2 + $0xe8] sm:$0xff] }
 0x528   :  { %672 = vmatpush.msrb.mxu0 %v2106_v4  ;;  %802 = vmatpush.msrb.mxu1 %v2107_v30  ;;  %v956_v30 = vld [vmem:[#allocation2 + $0xe0] sm:$0xff]  ;;  %v955_v4 = vld [vmem:[#allocation2 + $0xd8] sm:$0xff] }
 0x529   :  { %2006 = vmatmul.msk.f32.vlgmr.msrb.gmra.mxu0 %vm322_vm1, %v618_v33  ;;  %2011 = vmatmul.msk.f32.vlgmr.msrb.gmra.mxu1 %vm322_vm1, %v623_v5  ;;  %v954_v5 = vld [vmem:[#allocation2 + $0xd0] sm:$0xff] }
 0x52b   :  { %v602_v7 = vpop.xlane.xlu2 %601 }
 0x52c   :  { %2182 = vrcp.f32 %v602_v7 }
 0x52d   :  { %v756_v8 = vpop.permute.xlu0 %755  ;;  %2184 = vrcp.f32 %v608_v2 }
 0x52e   :  { %776 = vmatpush.msra.mxu0 %v756_v8 }
 0x530   :  { %978 = vmatpush.msrb.mxu0 %v957_v27 }
 0x532   :  { %v2183_v11 = vpop.eup %2182  ;;  %979 = vmatpush.msrb.mxu0 %v956_v30 }
 0x533   :  { %v622_v13 = vmul.f32 %v2183_v11, %v2169_v54  ;;  %v2100_v14 = vpop.permute.xlu1 %2099  ;;  %v808_v18 = vpop.permute.xlu2 %807  ;;  %v2128_v54 = vld [vmem:[#allocation2 + $0xb8] ss:$0 sm:$0xff] }
 0x534   :  { %v2102_v12 = vunpack.i.h.bf16 %v2100_v14  ;;  %v2101_v15 = vunpack.i.l.bf16 %v2100_v14  ;;  %v2185_v19 = vpop.eup %2184  ;;  %980 = vmatpush.msrb.mxu0 %v955_v4  ;;  %v2132_v4 = vld [vmem:[#allocation2 + $0x138] ss:$0 sm:$0xff] }
 0x535   :  { %2010 = vmatmul.msk.f32.vlgmr.msra.gmra.mxu0 %vm322_vm1, %v622_v13  ;;  %v624_v20 = vmul.f32 %v2185_v19, %v2465_v51 }
 0x536   :  { %724 = vmatpush.msrb.mxu2 %v2102_v12  ;;  %750 = vmatpush.msrb.mxu3 %v2101_v15 }
 0x537   :  { %2008 = vmatmul.msk.f32.vlgmr.msrb.gmra.mxu2 %vm322_vm1, %v620_v16  ;;  %2009 = vmatmul.msk.f32.vlgmr.msrb.gmra.mxu3 %vm322_vm1, %v621_v17 }
 0x538   :  { %828 = vmatpush.msra.mxu2 %v808_v18  ;;  %889 = vmatpush.msra.mxu3 %v868_v37  ;;  %v2129_v18 = vld [vmem:[#allocation2 + $0xc0] ss:$0 sm:$0xff] }
 0x539   :  { %981 = vmatpush.msrb.mxu0 %v954_v5 }
 0x53a   :  { %890 = vmatpush.msra.mxu3 %v867_v38 }
 0x53c   :  { %891 = vmatpush.msra.mxu3 %v866_v39 }
 0x53d   :  { %v648_v24 = vpop.f32.mrf.mxu3 }
 0x53e   :  { %892 = vmatpush.msra.mxu3 %v865_v40 }
 0x53f   :  { %2012 = vmatmul.msk.f32.vlgmr.msra.gmra.mxu2 %vm322_vm1, %v624_v20 }
 0x599   :  { %v700_v21 = vpop.f32.mrf.mxu1 }
 0x59a   :  { %835 = vrot.lane.b32.xlu0 %v700_v21, %s2294_s18 }
 0x5a6   :  { %v804_v22 = vpop.f32.mrf.mxu1  ;;  %v674_v23 = vpop.f32.mrf.mxu0 }
 0x5a7   :  { %851 = vrot.lane.b32.xlu0 %v804_v22, %s2304_s29 }
 0x5b2   :  { %v778_v25 = vpop.f32.mrf.mxu0 }
 0x5b3   :  { %845 = vrot.lane.b32.xlu2 %v778_v25, %s2305_s30 }
 0x5ba   :  { %v726_v29 = vpop.f32.mrf.mxu2  ;;  %v752_v31 = vpop.f32.mrf.mxu3 }
 0x5bb   :  { %843 = vrot.lane.b32.xlu1 %v752_v31, %s2305_s30 }
 0x5c2   :  { %v830_v36 = vpop.f32.mrf.mxu2 }
 0x5c3   :  { %837 = vrot.lane.b32.xlu1 %v726_v29, %s2294_s18  ;;  %853 = vrot.lane.b32.xlu0 %v830_v36, %s2304_s29 }
 0x60c   :  { %v836_v41 = vpop.permute.xlu0 %835 }
 0x60d   :  { %v857_v42 = vsel %vm322_vm1, %v648_v24, %v836_v41  ;;  %v846_v49 = vpop.permute.xlu2 %845  ;;  %v1014_v41 = vld [vmem:[#allocation2 + $0x130] sm:$0xff] }
 0x60e   :  { %1031 = vmatpush.msra.mxu1 %v1014_v41 }
 0x619   :  { %v852_v45 = vpop.permute.xlu0 %851 }
 0x62d   :  { %v844_v44 = vpop.permute.xlu1 %843 }
 0x62e   :  { %v860_v46 = vsel %vm859_vm2, %v857_v42, %v844_v44  ;;  %v1013_v42 = vld [vmem:[#allocation2 + $0x128] sm:$0xff]  ;;  %v1012_v44 = vld [vmem:[#allocation2 + $0x120] sm:$0xff] }
 0x62f   :  { %v863_v47 = vsel %vm862_vm3, %v860_v46, %v852_v45  ;;  %1032 = vmatpush.msra.mxu1 %v1013_v42  ;;  %v1011_v45 = vld [vmem:[#allocation2 + $0x118] sm:$0xff]  ;;  %v1010_v46 = vld [vmem:[#allocation2 + $0x110] sm:$0xff] }
 0x630   :  { %2013 = vmatmul.msk.f32.vlgmr.msra.gmra.mxu3 %vm213_vm9, %v863_v47  ;;  %v1009_v47 = vld [vmem:[#allocation2 + $0x108] sm:$0xff] }
 0x631   :  { %1033 = vmatpush.msra.mxu1 %v1012_v44 }
 0x633   :  { %1034 = vmatpush.msra.mxu1 %v1011_v45 }
 0x635   :  { %v838_v48 = vpop.permute.xlu1 %837  ;;  %v854_v51 = vpop.permute.xlu0 %853  ;;  %1035 = vmatpush.msra.mxu1 %v1010_v46  ;;  %v2133_v46 = vld [vmem:[#allocation2 + $0x140] ss:$0 sm:$0xff] }
 0x636   :  { %v858_v50 = vsel %vm322_vm1, %v674_v23, %v838_v48  ;;  %v2130_v23 = vld [vmem:[#allocation2 + $0xc8] ss:$0 sm:$0xff]  ;;  %v1008_v48 = vld [vmem:[#allocation2 + $0x100] sm:$0xff] }
 0x637   :  { %v861_v52 = vsel %vm859_vm2, %v858_v50, %v846_v49  ;;  %1036 = vmatpush.msra.mxu1 %v1009_v47  ;;  %v1007_v49 = vld [vmem:[#allocation2 + $0xf8] sm:$0xff]  ;;  %v2131_v50 = vld [vmem:[#allocation2 + $0xf0] ss:$0 sm:$0xff] }
 0x638   :  { %v864_v53 = vsel %vm862_vm3, %v861_v52, %v854_v51 }
 0x639   :  { %2014 = vmatmul.msk.f32.gmra.mxu3 %vm213_vm9, %v864_v53  ;;  %1037 = vmatpush.msra.mxu1 %v1008_v48 }
 0x63b   :  { %1038 = vmatpush.msra.mxu1 %v1007_v49 }
 0x6b3   :  { %v894_v55 = vpop.f32.mrf.mxu3 }
 0x6b4   :  { %v895_v56 = vadd.f32 %v2128_v54, %v894_v55 }
 0x6b6   :  { %v2509_v57 = vadd.f32 %v895_v56, %v2345_v28 }
 0x6b8   :  { %v904_v58 = vsel %vm213_vm9, %v2509_v57, 0.0 }
 0x6b9   :  { %905 = vadd.xlane.f32.xlu1 %v904_v58 }
 0x6bc   :  { %v897_v59 = vpop.f32.mrf.mxu3 }
 0x6bd   :  { %v898_v60 = vadd.f32 %v2128_v54, %v897_v59 }
 0x6bf   :  { %v2514_v26 = vadd.f32 %v898_v60, %v2349_v35 }
 0x6c1   :  { %v907_v32 = vsel %vm213_vm9, %v2514_v26, 0.0 }
 0x6c2   :  { %908 = vadd.xlane.f32.xlu2 %v907_v32 }
 0x72c   :  { %v906_v61 = vpop.xlane.xlu1 %905 }
 0x72d   :  { %v910_v62 = vmul.f32 %v906_v61, %v2353_v43 }
 0x72f   :  { %v912_v63 = vsub.f32 %v2509_v57, %v910_v62 }
 0x731   :  { %v914_v28 = vmul.f32 %v912_v63, %v912_v63 }
 0x733   :  { %v916_v0 = vsel %vm213_vm9, %v914_v28, 0.0 }
 0x734   :  { %917 = vadd.xlane.f32.xlu0 %v916_v0 }
 0x735   :  { %v909_v1 = vpop.xlane.xlu2 %908 }
 0x736   :  { %v911_v34 = vmul.f32 %v909_v1, %v2353_v43 }
 0x738   :  { %v913_v2 = vsub.f32 %v2514_v26, %v911_v34 }
 0x73a   :  { %v915_v35 = vmul.f32 %v913_v2, %v913_v2 }
 0x73c   :  { %v919_v3 = vsel %vm213_vm9, %v915_v35, 0.0 }
 0x73d   :  { %920 = vadd.xlane.f32.xlu1 %v919_v3 }
 0x7a7   :  { %v918_v33 = vpop.xlane.xlu0 %917 }
 0x7a8   :  { %v922_v6 = vmul.f32 %v918_v33, %v2353_v43 }
 0x7aa   :  { %v924_v7 = vadd.f32 1e-06, %v922_v6 }
 0x7ac   :  { %2186 = vrsqrt.f32 %v924_v7  ;;  %vm932_vm5 = vweird.f32 %v924_v7 }
 0x7b0   :  { %v921_v8 = vpop.xlane.xlu1 %920 }
 0x7b1   :  { %v923_v9 = vmul.f32 %v921_v8, %v2353_v43 }
 0x7b2   :  { %v2187_v10 = vpop.eup %2186 }
 0x7b3   :  { %v927_v11 = vmul.f32 %v2187_v10, %v924_v7  ;;  %v925_v13 = vadd.f32 1e-06, %v923_v9  ;;  %vm933_vm4 = vweird.f32 %v2187_v10 }
 0x7b4   :  { %vm934_vm6 = vmor %vm932_vm5, %vm933_vm4 }
 0x7b5   :  { %v928_v14 = vmul.f32 %v2187_v10, %v927_v11  ;;  %2188 = vrsqrt.f32 %v925_v13  ;;  %vm942_vm10 = vweird.f32 %v925_v13 }
 0x7b7   :  { %v929_v12 = vmul.f32 0.5, %v928_v14 }
 0x7b9   :  { %v930_v15 = vsub.f32 1.5, %v929_v12 }
 0x7bb   :  { %v2189_v16 = vpop.eup %2188  ;;  %v931_v17 = vmul.f32 %v2187_v10, %v930_v15 }
 0x7bc   :  { %v937_v19 = vmul.f32 %v2189_v16, %v925_v13  ;;  %vm943_vm7 = vweird.f32 %v2189_v16 }
 0x7bd   :  { %v935_v20 = vsel %vm934_vm6, %v2187_v10, %v931_v17  ;;  %vm944_vm11 = vmor %vm942_vm10, %vm943_vm7  ;;  %vm1879_vm10 = vcmask 1041409  }
 0x7be   :  { %v946_v21 = vmul.f32 %v935_v20, %v912_v63  ;;  %v938_v22 = vmul.f32 %v2189_v16, %v937_v19  ;;  %v1103_v20 = vld [vmem:[#allocation2 + $0x168] sm:$0xff] }
 0x7bf   :  { %1124 = vmatpush.msrb.mxu2 %v1103_v20 }
 0x7c0   :  { %v949_v24 = vmul.f32 %v2129_v18, %v946_v21  ;;  %v939_v25 = vmul.f32 0.5, %v938_v22  ;;  %v1102_v21 = vld [vmem:[#allocation2 + $0x160] sm:$0xff]  ;;  %v1101_v22 = vld [vmem:[#allocation2 + $0x158] sm:$0xff] }
 0x7c1   :  { %1125 = vmatpush.msrb.mxu2 %v1102_v21 }
 0x7c2   :  { %v940_v29 = vsub.f32 1.5, %v939_v25  ;;  %v952_v31 = vadd.f32 %v2130_v23, %v949_v24 }
 0x7c3   :  { %1126 = vmatpush.msrb.mxu2 %v1101_v22 }
 0x7c4   :  { %v941_v36 = vmul.f32 %v2189_v16, %v940_v29  ;;  %2015 = vmatmul.msk.f32.vlgmr.msrb.gmra.mxu0 %vm213_vm9, %v952_v31 }
 0x7c6   :  { %v945_v37 = vsel %vm944_vm11, %v2189_v16, %v941_v36  ;;  %vm1882_vm11 = vcmask 254976  }
 0x7c7   :  { %v947_v38 = vmul.f32 %v945_v37, %v913_v2 }
 0x7c9   :  { %v950_v39 = vmul.f32 %v2129_v18, %v947_v38 }
 0x7cb   :  { %v953_v40 = vadd.f32 %v2130_v23, %v950_v39  ;;  %v1100_v23 = vld [vmem:[#allocation2 + $0x150] sm:$0xff] }
 0x7cc   :  { %1127 = vmatpush.msrb.mxu2 %v1100_v23 }
 0x7cd   :  { %2016 = vmatmul.msk.f32.gmra.mxu0 %vm213_vm9, %v953_v40 }
 0x841   :  { %v983_v51 = vpop.f32.mrf.mxu0 }
 0x842   :  { %v984_v52 = vadd.f32 %v2131_v50, %v983_v51  ;;  %v2134_v51 = vld [vmem:[#allocation2 + $0x148] ss:$0 sm:$0xff] }
 0x844   :  { %v989_v53 = vmul.f32 %v984_v52, %v984_v52 }
 0x846   :  { %v991_v54 = vmul.f32 %v989_v53, %v984_v52 }
 0x848   :  { %v993_v55 = vmul.f32 0.044715, %v991_v54 }
 0x84a   :  { %v995_v56 = vadd.f32 %v993_v55, %v984_v52  ;;  %v986_v58 = vpop.f32.mrf.mxu0 }
 0x84b   :  { %v987_v59 = vadd.f32 %v2131_v50, %v986_v58 }
 0x84c   :  { %v997_v60 = vmul.f32 0.7978846, %v995_v56 }
 0x84d   :  { %v990_v32 = vmul.f32 %v987_v59, %v987_v59 }
 0x84e   :  { %2190 = vtanh.f32 %v997_v60 }
 0x84f   :  { %v992_v61 = vmul.f32 %v990_v32, %v987_v59 }
 0x851   :  { %v994_v62 = vmul.f32 0.044715, %v992_v61  ;;  %v2135_v61 = vld [vmem:[#allocation2 + $0x170] ss:$0 sm:$0xff] }
 0x853   :  { %v996_v63 = vadd.f32 %v994_v62, %v987_v59 }
 0x854   :  { %v2191_v28 = vpop.eup %2190 }
 0x855   :  { %v1001_v0 = vadd.f32 1.0, %v2191_v28  ;;  %v998_v1 = vmul.f32 0.7978846, %v996_v63 }
 0x857   :  { %v1003_v34 = vmul.f32 0.5, %v1001_v0  ;;  %2192 = vtanh.f32 %v998_v1 }
 0x859   :  { %v1005_v2 = vmul.f32 %v1003_v34, %v984_v52 }
 0x85b   :  { %2017 = vmatmul.msk.f32.vlgmr.msra.gmra.mxu1 %vm179_vm8, %v1005_v2 }
 0x85d   :  { %v2193_v35 = vpop.eup %2192 }
 0x85e   :  { %v1002_v3 = vadd.f32 1.0, %v2193_v35 }
 0x860   :  { %v1004_v27 = vmul.f32 0.5, %v1002_v3 }
 0x862   :  { %v1006_v30 = vmul.f32 %v1004_v27, %v987_v59 }
 0x864   :  { %2018 = vmatmul.msk.f32.gmra.mxu1 %vm179_vm8, %v1006_v30 }
 0x8d8   :  { %v1040_v5 = vpop.f32.mrf.mxu1 }
 0x8d9   :  { %v1041_v33 = vadd.f32 %v2132_v4, %v1040_v5 }
 0x8db   :  { %v2531_v6 = vadd.f32 %v1041_v33, %v2509_v57 }
 0x8dd   :  { %v1050_v7 = vsel %vm213_vm9, %v2531_v6, 0.0 }
 0x8de   :  { %1051 = vadd.xlane.f32.xlu2 %v1050_v7 }
 0x8e1   :  { %v1043_v8 = vpop.f32.mrf.mxu1 }
 0x8e2   :  { %v1044_v9 = vadd.f32 %v2132_v4, %v1043_v8 }
 0x8e4   :  { %v2536_v10 = vadd.f32 %v1044_v9, %v2514_v26 }
 0x8e6   :  { %v1053_v11 = vsel %vm213_vm9, %v2536_v10, 0.0 }
 0x8e7   :  { %1054 = vadd.xlane.f32.xlu0 %v1053_v11 }
 0x951   :  { %v1052_v13 = vpop.xlane.xlu2 %1051 }
 0x952   :  { %v1056_v14 = vmul.f32 %v1052_v13, %v2353_v43 }
 0x954   :  { %v1058_v12 = vsub.f32 %v2531_v6, %v1056_v14 }
 0x956   :  { %v1060_v57 = vmul.f32 %v1058_v12, %v1058_v12 }
 0x958   :  { %v1062_v15 = vsel %vm213_vm9, %v1060_v57, 0.0 }
 0x959   :  { %1063 = vadd.xlane.f32.xlu1 %v1062_v15 }
 0x95a   :  { %v1055_v16 = vpop.xlane.xlu0 %1054 }
 0x95b   :  { %v1057_v17 = vmul.f32 %v1055_v16, %v2353_v43 }
 0x95d   :  { %v1059_v18 = vsub.f32 %v2536_v10, %v1057_v17 }
 0x95f   :  { %v1061_v26 = vmul.f32 %v1059_v18, %v1059_v18 }
 0x961   :  { %v1065_v19 = vsel %vm213_vm9, %v1061_v26, 0.0 }
 0x962   :  { %1066 = vadd.xlane.f32.xlu2 %v1065_v19 }
 0x9cc   :  { %v1064_v24 = vpop.xlane.xlu1 %1063 }
 0x9cd   :  { %v1068_v25 = vmul.f32 %v1064_v24, %v2353_v43 }
 0x9cf   :  { %v1070_v29 = vadd.f32 1e-06, %v1068_v25 }
 0x9d1   :  { %2194 = vrsqrt.f32 %v1070_v29  ;;  %vm1078_vm13 = vweird.f32 %v1070_v29 }
 0x9d5   :  { %v1067_v31 = vpop.xlane.xlu2 %1066 }
 0x9d6   :  { %v1069_v36 = vmul.f32 %v1067_v31, %v2353_v43 }
 0x9d7   :  { %v2195_v37 = vpop.eup %2194 }
 0x9d8   :  { %v1073_v38 = vmul.f32 %v2195_v37, %v1070_v29  ;;  %v1071_v39 = vadd.f32 1e-06, %v1069_v36  ;;  %vm1079_vm12 = vweird.f32 %v2195_v37 }
 0x9d9   :  { %vm1080_vm14 = vmor %vm1078_vm13, %vm1079_vm12 }
 0x9da   :  { %v1074_v40 = vmul.f32 %v2195_v37, %v1073_v38  ;;  %2196 = vrsqrt.f32 %v1071_v39  ;;  %vm1088_vm0 = vweird.f32 %v1071_v39 }
 0x9dc   :  { %v1075_v41 = vmul.f32 0.5, %v1074_v40 }
 0x9de   :  { %v1076_v42 = vsub.f32 1.5, %v1075_v41 }
 0x9e0   :  { %v2197_v44 = vpop.eup %2196  ;;  %v1077_v45 = vmul.f32 %v2195_v37, %v1076_v42 }
 0x9e1   :  { %v1083_v47 = vmul.f32 %v2197_v44, %v1071_v39  ;;  %vm1089_vm15 = vweird.f32 %v2197_v44 }
 0x9e2   :  { %v1081_v48 = vsel %vm1080_vm14, %v2195_v37, %v1077_v45  ;;  %vm1090_vm4 = vmor %vm1088_vm0, %vm1089_vm15 }
 0x9e3   :  { %v1092_v49 = vmul.f32 %v1081_v48, %v1058_v12  ;;  %v1084_v50 = vmul.f32 %v2197_v44, %v1083_v47 }
 0x9e5   :  { %v1095_v52 = vmul.f32 %v2133_v46, %v1092_v49  ;;  %v1085_v53 = vmul.f32 0.5, %v1084_v50 }
 0x9e7   :  { %v1086_v54 = vsub.f32 1.5, %v1085_v53  ;;  %v1098_v55 = vadd.f32 %v2134_v51, %v1095_v52 }
 0x9e9   :  { %v1087_v56 = vmul.f32 %v2197_v44, %v1086_v54  ;;  %2019 = vmatmul.msk.f32.vlgmr.msrb.gmra.mxu2 %vm213_vm9, %v1098_v55 }
 0x9eb   :  { %v1091_v58 = vsel %vm1090_vm4, %v2197_v44, %v1087_v56 }
 0x9ec   :  { %v1093_v59 = vmul.f32 %v1091_v58, %v1059_v18 }
 0x9ee   :  { %v1096_v60 = vmul.f32 %v2133_v46, %v1093_v59 }
 0x9f0   :  { %v1099_v32 = vadd.f32 %v2134_v51, %v1096_v60 }
 0x9f2   :  { %2020 = vmatmul.msk.f32.gmra.mxu2 %vm213_vm9, %v1099_v32 }
 0xa6c   :  { %v1129_v62 = vpop.f32.mrf.mxu2 }
 0xa6d   :  { %v2550_v63 = vadd.f32 %v2135_v61, %v1129_v62 }
 0xa6f   :  { %1145 = vrot.lane.b32.xlu2 %v2550_v63, %s2301_s26  ;;  %1137 = vrot.lane.b32.xlu0 %v2550_v63, %s2300_s25 }
 0xa75   :  { %v1132_v28 = vpop.f32.mrf.mxu2 }
 0xa76   :  { %v2556_v0 = vadd.f32 %v2135_v61, %v1132_v28 }
 0xa77   :  { %1149 = vrot.lane.b32.xlu2 %v2550_v63, %s2302_s27 }
 0xa78   :  { %1147 = vrot.lane.b32.xlu0 %v2556_v0, %s2301_s26  ;;  %1139 = vrot.lane.b32.xlu1 %v2556_v0, %s2300_s25 }
 0xa80   :  { %1143 = vrot.lane.b32.xlu0 %v2556_v0, %s2299_s0  ;;  %1141 = vrot.lane.b32.xlu1 %v2550_v63, %s2299_s0 }
 0xac9   :  { %v2568_v1 = vpop.permute.xlu2 %1145 }
 0xaca   :  { %1305 = vrot.lane.b32.xlu2 %v2568_v1, %s2302_s27 }
 0xad1   :  { %v1150_v34 = vpop.permute.xlu2 %1149 }
 0xad2   :  { %2021 = vmatpush.xpose.msk.msrb.mxu3 %vm322_vm1, %v1150_v34 }
 0xad5   :  { %2022 = vmatmul.msk.f32.vlgmr.msrb.gmra.mxu3 %vm322_vm1, %v2550_v63 }
 0xae1   :  { %v2575_v2 = vpop.permute.xlu0 %1137 }
 0xae2   :  { %1201 = vrot.lane.b32.xlu1 %v2575_v2, %s2302_s27  ;;  %v2108_v48 = vpack.i.bf16 %v2550_v63, %v2575_v2 }
 0xaea   :  { %v2579_v35 = vpop.permute.xlu0 %1147  ;;  %1175 = vrot.lane.b32.xlu1 %v2556_v0, %s2302_s27  ;;  %v2583_v3 = vpop.permute.xlu1 %1139 }
 0xaeb   :  { %1227 = vrot.lane.b32.xlu0 %v2583_v3, %s2302_s27 }
 0xaf2   :  { %v2587_v27 = vpop.permute.xlu0 %1143  ;;  %v2589_v30 = vpop.permute.xlu1 %1141 }
 0xaf3   :  { %1279 = vrot.lane.b32.xlu1 %v2587_v27, %s2302_s27  ;;  %1331 = vrot.lane.b32.xlu0 %v2579_v35, %s2302_s27  ;;  %v2118_v49 = vpack.i.bf16 %v2589_v30, %v2556_v0 }
 0xaf4   :  { %1253 = vrot.lane.b32.xlu2 %v2589_v30, %s2302_s27 }
 0xb24   :  { %v1306_v5 = vpop.permute.xlu2 %1305 }
 0xb4e   :  { %v1254_v11 = vpop.permute.xlu2 %1253 }
 0xb54   :  { %v1202_v4 = vpop.permute.xlu1 %1201 }
 0xb55   :  { %2025 = vmatpush.xpose.msk.msra.mxu2 %vm322_vm1, %v1202_v4 }
 0xb58   :  { %v1172_v33 = vpop.f32.mrf.mxu3  ;;  %2026 = vmatmul.msk.f32.vlgmr.msra.gmra.mxu2 %vm322_vm1, %v2575_v2 }
 0xb59   :  { %2033 = vmatpush.xpose.msk.msrb.mxu2 %vm322_vm1, %v1306_v5  ;;  %v1357_v7 = vmul.f32 0.35355338, %v1172_v33 }
 0xb5b   :  { %v1365_v8 = vsel %vm322_vm1, %v1357_v7, -inf }
 0xb5c   :  { %v1176_v9 = vpop.permute.xlu1 %1175  ;;  %1366 = vmax.xlane.f32.xlu2 %v1365_v8 }
 0xb5d   :  { %v1228_v13 = vpop.permute.xlu0 %1227  ;;  %2023 = vmatpush.xpose.msk.msra.mxu0 %vm322_vm1, %v1176_v9 }
 0xb5e   :  { %2027 = vmatpush.xpose.msk.msra.mxu3 %vm322_vm1, %v1228_v13 }
 0xb60   :  { %2024 = vmatmul.msk.f32.vlgmr.msra.gmra.mxu0 %vm322_vm1, %v2556_v0  ;;  %2034 = vmatmul.msk.f32.vlgmr.msrb.gmra.mxu2 %vm322_vm1, %v2568_v1 }
 0xb61   :  { %2029 = vmatpush.xpose.msk.msrb.mxu0 %vm322_vm1, %v1254_v11  ;;  %2028 = vmatmul.msk.f32.vlgmr.msra.gmra.mxu3 %vm322_vm1, %v2583_v3 }
 0xb65   :  { %v1332_v14 = vpop.permute.xlu0 %1331  ;;  %v1280_v12 = vpop.permute.xlu1 %1279 }
 0xb66   :  { %2031 = vmatpush.xpose.msk.msrb.mxu1 %vm322_vm1, %v1280_v12  ;;  %2035 = vmatpush.xpose.msk.msrb.mxu3 %vm322_vm1, %v1332_v14 }
 0xb68   :  { %2030 = vmatmul.msk.f32.vlgmr.msrb.gmra.mxu0 %vm322_vm1, %v2589_v30 }
 0xb69   :  { %2032 = vmatmul.msk.f32.vlgmr.msrb.gmra.mxu1 %vm322_vm1, %v2587_v27  ;;  %2036 = vmatmul.msk.f32.vlgmr.msrb.gmra.mxu3 %vm322_vm1, %v2579_v35 }
 0xbcf   :  { %v1367_v19 = vpop.xlane.xlu2 %1366 }
 0xbd0   :  { %v1389_v24 = vsub.f32 %v1357_v7, %v1367_v19 }
 0xbd2   :  { %v1397_v39 = vmul.f32 1.442695, %v1389_v24 }
 0xbd4   :  { %2198 = vpow2.f32 %v1397_v39 }
 0xbda   :  { %v2199_v46 = vpop.eup %2198 }
 0xbdb   :  { %v1224_v57 = vpop.f32.mrf.mxu2  ;;  %v1413_v47 = vsel %vm322_vm1, %v2199_v46, 0.0 }
 0xbdc   :  { %v1359_v15 = vmul.f32 0.35355338, %v1224_v57 }
 0xbdd   :  { %v1198_v16 = vpop.f32.mrf.mxu0 }
 0xbde   :  { %v1358_v17 = vmul.f32 0.35355338, %v1198_v16  ;;  %v1371_v18 = vsel %vm322_vm1, %v1359_v15, -inf }
 0xbdf   :  { %1372 = vmax.xlane.f32.xlu0 %v1371_v18 }
 0xbe0   :  { %v1368_v26 = vsel %vm322_vm1, %v1358_v17, -inf }
 0xbe1   :  { %1369 = vmax.xlane.f32.xlu2 %v1368_v26 }
 0xbe3   :  { %v1328_v20 = vpop.f32.mrf.mxu2 }
 0xbe4   :  { %v1363_v21 = vmul.f32 0.35355338, %v1328_v20  ;;  %v1250_v22 = vpop.f32.mrf.mxu3 }
 0xbe5   :  { %v1276_v23 = vpop.f32.mrf.mxu0  ;;  %v1360_v40 = vmul.f32 0.35355338, %v1250_v22 }
 0xbe6   :  { %v1361_v25 = vmul.f32 0.35355338, %v1276_v23  ;;  %v1302_v29 = vpop.f32.mrf.mxu1  ;;  %v1383_v31 = vsel %vm322_vm1, %v1363_v21, -inf }
 0xbe7   :  { %v1362_v36 = vmul.f32 0.35355338, %v1302_v29  ;;  %1384 = vmax.xlane.f32.xlu0 %v1383_v31  ;;  %v1374_v45 = vsel %vm322_vm1, %v1360_v40, -inf }
 0xbe8   :  { %v1377_v37 = vsel %vm322_vm1, %v1361_v25, -inf }
 0xbe9   :  { %1378 = vmax.xlane.f32.xlu1 %v1377_v37  ;;  %v1380_v38 = vsel %vm322_vm1, %v1362_v36, -inf }
 0xbea   :  { %1381 = vmax.xlane.f32.xlu2 %v1380_v38 }
 0xbec   :  { %v1354_v41 = vpop.f32.mrf.mxu3 }
 0xbed   :  { %v1364_v42 = vmul.f32 0.35355338, %v1354_v41 }
 0xbef   :  { %v1386_v44 = vsel %vm322_vm1, %v1364_v42, -inf }
 0xbf0   :  { %1387 = vmax.xlane.f32.xlu0 %v1386_v44 }
 0xbf1   :  { %1375 = vmax.xlane.f32.xlu1 %v1374_v45 }
 0xbf8   :  { %1414 = vadd.xlane.f32.xlu0 %v1413_v47 }
 0xc0c   :  { %2109 = vrot.lane.b32.xlu0 %v2108_v48, %s2303_s28 }
 0xc14   :  { %2119 = vrot.lane.b32.xlu0 %v2118_v49, %s2303_s28 }
 0xc1c   :  { %1583 = vrot.lane.b32.xlu0 %v2587_v27, %s2303_s28 }
 0xc52   :  { %v1373_v52 = vpop.xlane.xlu0 %1372 }
 0xc53   :  { %v1391_v58 = vsub.f32 %v1359_v15, %v1373_v52 }
 0xc54   :  { %v1370_v50 = vpop.xlane.xlu2 %1369 }
 0xc55   :  { %v1390_v51 = vsub.f32 %v1358_v17, %v1370_v50  ;;  %v1401_v61 = vmul.f32 1.442695, %v1391_v58 }
 0xc57   :  { %v1399_v53 = vmul.f32 1.442695, %v1390_v51 }
 0xc59   :  { %2200 = vpow2.f32 %v1399_v53 }
 0xc5a   :  { %v1385_v60 = vpop.xlane.xlu0 %1384 }
 0xc5b   :  { %v1395_v0 = vsub.f32 %v1363_v21, %v1385_v60 }
 0xc5c   :  { %v1379_v54 = vpop.xlane.xlu1 %1378 }
 0xc5d   :  { %v1393_v55 = vsub.f32 %v1361_v25, %v1379_v54  ;;  %v1382_v62 = vpop.xlane.xlu2 %1381  ;;  %v1409_v4 = vmul.f32 1.442695, %v1395_v0 }
 0xc5e   :  { %v1394_v2 = vsub.f32 %v1362_v36, %v1382_v62  ;;  %v2113_v36 = vpack.i.bf16 %v2568_v1, %v2583_v3 }
 0xc5f   :  { %v2635_v56 = vpop.eup %2200  ;;  %v1405_v59 = vmul.f32 1.442695, %v1393_v55 }
 0xc60   :  { %v1416_v32 = vsel %vm322_vm1, %v2635_v56, 0.0  ;;  %v1407_v33 = vmul.f32 1.442695, %v1394_v2 }
 0xc61   :  { %2202 = vpow2.f32 %v1405_v59  ;;  %1417 = vadd.xlane.f32.xlu2 %v1416_v32 }
 0xc62   :  { %2204 = vpow2.f32 %v1401_v61 }
 0xc63   :  { %v1388_v5 = vpop.xlane.xlu0 %1387 }
 0xc64   :  { %v1376_v63 = vpop.xlane.xlu1 %1375  ;;  %v1396_v9 = vsub.f32 %v1364_v42, %v1388_v5  ;;  %v1691_v5 = vld [vmem:[#allocation2 + $0x178] sm:$0xff] }
 0xc65   :  { %v1392_v28 = vsub.f32 %v1360_v40, %v1376_v63 }
 0xc66   :  { %v1411_v12 = vmul.f32 1.442695, %v1396_v9 }
 0xc67   :  { %v2203_v34 = vpop.eup %2202  ;;  %v1403_v27 = vmul.f32 1.442695, %v1392_v28 }
 0xc68   :  { %v1425_v30 = vsel %vm322_vm1, %v2203_v34, 0.0  ;;  %v2205_v7 = vpop.eup %2204 }
 0xc69   :  { %2206 = vpow2.f32 %v1403_v27  ;;  %1426 = vadd.xlane.f32.xlu1 %v1425_v30  ;;  %v1419_v11 = vsel %vm322_vm1, %v2205_v7, 0.0  ;;  %v1694_v27 = vld [vmem:[#allocation2 + $0x190] sm:$0xff]  ;;  %v1693_v30 = vld [vmem:[#allocation2 + $0x188] sm:$0xff] }
 0xc6a   :  { %2208 = vpow2.f32 %v1409_v4  ;;  %v1692_v4 = vld [vmem:[#allocation2 + $0x180] sm:$0xff] }
 0xc6b   :  { %2210 = vpow2.f32 %v1407_v33  ;;  %v1415_v57 = vpop.xlane.xlu0 %1414 }
 0xc6c   :  { %2212 = vrcp.f32 %v1415_v57 }
 0xc6d   :  { %2214 = vpow2.f32 %v1411_v12 }
 0xc6f   :  { %v2640_v8 = vpop.eup %2206 }
 0xc70   :  { %v1422_v13 = vsel %vm322_vm1, %v2640_v8, 0.0  ;;  %v2645_v14 = vpop.eup %2208 }
 0xc71   :  { %1420 = vadd.xlane.f32.xlu1 %v1419_v11  ;;  %1423 = vadd.xlane.f32.xlu2 %v1422_v13  ;;  %v2211_v15 = vpop.eup %2210  ;;  %v1431_v16 = vsel %vm322_vm1, %v2645_v14, 0.0 }
 0xc72   :  { %v1428_v17 = vsel %vm322_vm1, %v2211_v15, 0.0  ;;  %v2213_v18 = vpop.eup %2212 }
 0xc73   :  { %v2215_v26 = vpop.eup %2214  ;;  %v1445_v22 = vmul.f32 %v2213_v18, %v2199_v46  ;;  %v2136_v18 = vld [vmem:[#allocation2 + $0x198] ss:$0 sm:$0xff] }
 0xc74   :  { %v1434_v23 = vsel %vm322_vm1, %v2215_v26, 0.0 }
 0xc79   :  { %1432 = vadd.xlane.f32.xlu1 %v1431_v16  ;;  %1429 = vadd.xlane.f32.xlu2 %v1428_v17 }
 0xc7e   :  { %v2110_v19 = vpop.permute.xlu0 %2109 }
 0xc7f   :  { %v2112_v20 = vunpack.i.h.bf16 %v2110_v19  ;;  %v2111_v21 = vunpack.i.l.bf16 %v2110_v19 }
 0xc81   :  { %1474 = vmatpush.msra.mxu0 %v2112_v20  ;;  %1526 = vmatpush.msra.mxu2 %v2111_v21 }
 0xc82   :  { %1435 = vadd.xlane.f32.xlu2 %v1434_v23  ;;  %2037 = vmatmul.msk.f32.vlgmr.msra.gmra.mxu0 %vm322_vm1, %v1445_v22 }
 0xc86   :  { %v2120_v24 = vpop.permute.xlu0 %2119 }
 0xc87   :  { %v2122_v25 = vunpack.i.h.bf16 %v2120_v24  ;;  %v2121_v29 = vunpack.i.l.bf16 %v2120_v24 }
 0xc89   :  { %1500 = vmatpush.msra.mxu1 %v2121_v29  ;;  %1578 = vmatpush.msrb.mxu0 %v2122_v25 }
 0xc8b   :  { %1715 = vmatpush.msra.mxu0 %v1694_v27 }
 0xc8d   :  { %1716 = vmatpush.msra.mxu0 %v1693_v30 }
 0xc8e   :  { %v1584_v31 = vpop.permute.xlu0 %1583 }
 0xc8f   :  { %1604 = vmatpush.msrb.mxu1 %v1584_v31  ;;  %1717 = vmatpush.msra.mxu0 %v1692_v4 }
 0xc91   :  { %1718 = vmatpush.msra.mxu0 %v1691_v5 }
 0xc92   :  { %2114 = vrot.lane.b32.xlu1 %v2113_v36, %s2303_s28 }
 0xc9a   :  { %1635 = vrot.lane.b32.xlu2 %v2579_v35, %s2303_s28 }
 0xcd4   :  { %v1418_v37 = vpop.xlane.xlu2 %1417 }
 0xcd5   :  { %2216 = vrcp.f32 %v1418_v37 }
 0xcdb   :  { %v2217_v38 = vpop.eup %2216 }
 0xcdc   :  { %v1446_v39 = vmul.f32 %v2217_v38, %v2635_v56  ;;  %v1427_v40 = vpop.xlane.xlu1 %1426 }
 0xcdd   :  { %2218 = vrcp.f32 %v1427_v40 }
 0xcde   :  { %2038 = vmatmul.msk.f32.vlgmr.msra.gmra.mxu1 %vm322_vm1, %v1446_v39 }
 0xce3   :  { %v2219_v41 = vpop.eup %2218 }
 0xce4   :  { %v1449_v42 = vmul.f32 %v2219_v41, %v2203_v34  ;;  %v1421_v44 = vpop.xlane.xlu1 %1420  ;;  %v1424_v45 = vpop.xlane.xlu2 %1423 }
 0xce5   :  { %2220 = vrcp.f32 %v1421_v44  ;;  %v1782_v44 = vld [vmem:[#allocation2 + $0x1c0] sm:$0xff] }
 0xce6   :  { %2041 = vmatmul.msk.f32.vlgmr.msrb.gmra.mxu0 %vm322_vm1, %v1449_v42  ;;  %v1783_v42 = vld [vmem:[#allocation2 + $0x1c8] sm:$0xff] }
 0xce7   :  { %1804 = vmatpush.msra.mxu1 %v1783_v42 }
 0xce9   :  { %1805 = vmatpush.msra.mxu1 %v1782_v44 }
 0xceb   :  { %v2221_v1 = vpop.eup %2220 }
 0xcec   :  { %v1447_v3 = vmul.f32 %v2221_v1, %v2205_v7  ;;  %v1430_v46 = vpop.xlane.xlu2 %1429  ;;  %v1433_v48 = vpop.xlane.xlu1 %1432  ;;  %v1780_v1 = vld [vmem:[#allocation2 + $0x1b0] sm:$0xff] }
 0xced   :  { %2222 = vrcp.f32 %v1430_v46 }
 0xcee   :  { %2039 = vmatmul.msk.f32.vlgmr.msra.gmra.mxu2 %vm322_vm1, %v1447_v3  ;;  %2224 = vrcp.f32 %v1424_v45  ;;  %v1781_v45 = vld [vmem:[#allocation2 + $0x1b8] sm:$0xff] }
 0xcef   :  { %2226 = vrcp.f32 %v1433_v48  ;;  %1806 = vmatpush.msra.mxu1 %v1781_v45 }
 0xcf1   :  { %1807 = vmatpush.msra.mxu1 %v1780_v1  ;;  %v2140_v1 = vld [vmem:[#allocation2 + $0x218] ss:$0 sm:$0xff] }
 0xcf3   :  { %v2223_v35 = vpop.eup %2222 }
 0xcf4   :  { %v1450_v47 = vmul.f32 %v2223_v35, %v2211_v15  ;;  %v2225_v50 = vpop.eup %2224 }
 0xcf5   :  { %v1436_v49 = vpop.xlane.xlu2 %1435  ;;  %v2227_v51 = vpop.eup %2226  ;;  %v1448_v55 = vmul.f32 %v2225_v50, %v2640_v8 }
 0xcf6   :  { %2042 = vmatmul.msk.f32.vlgmr.msrb.gmra.mxu1 %vm322_vm1, %v1450_v47  ;;  %2228 = vrcp.f32 %v1436_v49  ;;  %v1451_v56 = vmul.f32 %v2227_v51, %v2645_v14 }
 0xcfc   :  { %v2229_v59 = vpop.eup %2228 }
 0xcfd   :  { %v1636_v58 = vpop.permute.xlu2 %1635  ;;  %v1452_v60 = vmul.f32 %v2229_v59, %v2215_v26  ;;  %v2137_v59 = vld [vmem:[#allocation2 + $0x1a0] ss:$0 sm:$0xff] }
 0xcff   :  { %v1476_v32 = vpop.f32.mrf.mxu0 }
 0xd04   :  { %v2115_v52 = vpop.permute.xlu1 %2114 }
 0xd05   :  { %v2117_v53 = vunpack.i.h.bf16 %v2115_v52  ;;  %v2116_v54 = vunpack.i.l.bf16 %v2115_v52 }
 0xd07   :  { %1552 = vmatpush.msra.mxu3 %v2116_v54  ;;  %1630 = vmatpush.msrb.mxu2 %v2117_v53 }
 0xd08   :  { %2040 = vmatmul.msk.f32.vlgmr.msra.gmra.mxu3 %vm322_vm1, %v1448_v55  ;;  %2043 = vmatmul.msk.f32.vlgmr.msrb.gmra.mxu2 %vm322_vm1, %v1451_v56 }
 0xd09   :  { %1656 = vmatpush.msrb.mxu3 %v1636_v58 }
 0xd10   :  { %2044 = vmatmul.msk.f32.vlgmr.msrb.gmra.mxu3 %vm322_vm1, %v1452_v60 }
 0xd5b   :  { %v1502_v62 = vpop.f32.mrf.mxu1 }
 0xd63   :  { %v1580_v61 = vpop.f32.mrf.mxu0 }
 0xd64   :  { %1671 = vrot.lane.b32.xlu1 %v1580_v61, %s2305_s30 }
 0xd71   :  { %v1528_v63 = vpop.f32.mrf.mxu2 }
 0xd72   :  { %1663 = vrot.lane.b32.xlu0 %v1528_v63, %s2294_s18 }
 0xd73   :  { %v1606_v28 = vpop.f32.mrf.mxu1 }
 0xd74   :  { %1673 = vrot.lane.b32.xlu2 %v1606_v28, %s2305_s30 }
 0xd8b   :  { %v1554_v0 = vpop.f32.mrf.mxu3  ;;  %v1632_v34 = vpop.f32.mrf.mxu2 }
 0xd8c   :  { %1679 = vrot.lane.b32.xlu0 %v1632_v34, %s2304_s29  ;;  %1665 = vrot.lane.b32.xlu1 %v1554_v0, %s2294_s18 }
 0xd93   :  { %v1658_v2 = vpop.f32.mrf.mxu3 }
 0xd94   :  { %1681 = vrot.lane.b32.xlu0 %v1658_v2, %s2304_s29 }
 0xdce   :  { %v1674_v57 = vpop.permute.xlu2 %1673 }
 0xdd6   :  { %v1672_v7 = vpop.permute.xlu1 %1671 }
 0xde4   :  { %v1664_v33 = vpop.permute.xlu0 %1663 }
 0xde5   :  { %v1685_v8 = vsel %vm322_vm1, %v1476_v32, %v1664_v33  ;;  %v1840_v33 = vld [vmem:[#allocation2 + $0x210] sm:$0xff] }
 0xde6   :  { %v1687_v9 = vsel %vm859_vm2, %v1685_v8, %v1672_v7  ;;  %1857 = vmatpush.msra.mxu2 %v1840_v33  ;;  %v1839_v7 = vld [vmem:[#allocation2 + $0x208] sm:$0xff]  ;;  %v1838_v8 = vld [vmem:[#allocation2 + $0x200] sm:$0xff] }
 0xde8   :  { %1858 = vmatpush.msra.mxu2 %v1839_v7 }
 0xdea   :  { %1859 = vmatpush.msra.mxu2 %v1838_v8  ;;  %v2141_v8 = vld [vmem:[#allocation2 + $0x220] ss:$0 sm:$0xff] }
 0xdfe   :  { %v1680_v11 = vpop.permute.xlu0 %1679  ;;  %v1666_v14 = vpop.permute.xlu1 %1665 }
 0xdff   :  { %v1689_v13 = vsel %vm862_vm3, %v1687_v9, %v1680_v11  ;;  %v1686_v12 = vsel %vm322_vm1, %v1502_v62, %v1666_v14  ;;  %v2138_v62 = vld [vmem:[#allocation2 + $0x1a8] ss:$0 sm:$0xff]  ;;  %v1837_v9 = vld [vmem:[#allocation2 + $0x1f8] sm:$0xff]  ;;  %v1836_v11 = vld [vmem:[#allocation2 + $0x1f0] sm:$0xff] }
 0xe00   :  { %2045 = vmatmul.msk.f32.vlgmr.msra.gmra.mxu0 %vm213_vm9, %v1689_v13  ;;  %v1688_v16 = vsel %vm859_vm2, %v1686_v12, %v1674_v57  ;;  %1860 = vmatpush.msra.mxu2 %v1837_v9  ;;  %v1835_v13 = vld [vmem:[#allocation2 + $0x1e8] sm:$0xff]  ;;  %v1834_v14 = vld [vmem:[#allocation2 + $0x1e0] sm:$0xff]  ;;  %v1833_v12 = vld [vmem:[#allocation2 + $0x1d8] sm:$0xff] }
 0xe01   :  { %v2139_v57 = vld [vmem:[#allocation2 + $0x1d0] ss:$0 sm:$0xff] }
 0xe02   :  { %1861 = vmatpush.msra.mxu2 %v1836_v11 }
 0xe04   :  { %1862 = vmatpush.msra.mxu2 %v1835_v13 }
 0xe06   :  { %v1682_v15 = vpop.permute.xlu0 %1681  ;;  %1863 = vmatpush.msra.mxu2 %v1834_v14 }
 0xe07   :  { %v1690_v17 = vsel %vm862_vm3, %v1688_v16, %v1682_v15 }
 0xe08   :  { %2046 = vmatmul.msk.f32.gmra.mxu0 %vm213_vm9, %v1690_v17  ;;  %1864 = vmatpush.msra.mxu2 %v1833_v12 }
 0xe7d   :  { %v1720_v26 = vpop.f32.mrf.mxu0 }
 0xe7e   :  { %v1721_v19 = vadd.f32 %v2136_v18, %v1720_v26 }
 0xe80   :  { %v2682_v20 = vadd.f32 %v1721_v19, %v2531_v6 }
 0xe82   :  { %v1730_v21 = vsel %vm213_vm9, %v2682_v20, 0.0 }
 0xe83   :  { %1731 = vadd.xlane.f32.xlu1 %v1730_v21 }
 0xe85   :  { %v1723_v22 = vpop.f32.mrf.mxu0 }
 0xe86   :  { %v1724_v23 = vadd.f32 %v2136_v18, %v1723_v22 }
 0xe88   :  { %v2687_v24 = vadd.f32 %v1724_v23, %v2536_v10 }
 0xe8a   :  { %v1733_v25 = vsel %vm213_vm9, %v2687_v24, 0.0 }
 0xe8b   :  { %1734 = vadd.xlane.f32.xlu2 %v1733_v25 }
 0xef6   :  { %v1732_v29 = vpop.xlane.xlu1 %1731 }
 0xef7   :  { %v1736_v31 = vmul.f32 %v1732_v29, %v2353_v43 }
 0xef9   :  { %v1738_v36 = vsub.f32 %v2682_v20, %v1736_v31 }
 0xefb   :  { %v1740_v6 = vmul.f32 %v1738_v36, %v1738_v36 }
 0xefd   :  { %v1742_v37 = vsel %vm213_vm9, %v1740_v6, 0.0 }
 0xefe   :  { %1743 = vadd.xlane.f32.xlu0 %v1742_v37  ;;  %v1735_v38 = vpop.xlane.xlu2 %1734 }
 0xeff   :  { %v1737_v39 = vmul.f32 %v1735_v38, %v2353_v43 }
 0xf01   :  { %v1739_v40 = vsub.f32 %v2687_v24, %v1737_v39 }
 0xf03   :  { %v1741_v10 = vmul.f32 %v1739_v40, %v1739_v40 }
 0xf05   :  { %v1745_v41 = vsel %vm213_vm9, %v1741_v10, 0.0 }
 0xf06   :  { %1746 = vadd.xlane.f32.xlu2 %v1745_v41 }
 0xf71   :  { %v1744_v3 = vpop.xlane.xlu0 %1743 }
 0xf72   :  { %v1748_v46 = vmul.f32 %v1744_v3, %v2353_v43 }
 0xf74   :  { %v1750_v35 = vadd.f32 1e-06, %v1748_v46 }
 0xf76   :  { %2230 = vrsqrt.f32 %v1750_v35  ;;  %vm1758_vm2 = vweird.f32 %v1750_v35 }
 0xf79   :  { %v1747_v47 = vpop.xlane.xlu2 %1746 }
 0xf7a   :  { %v1749_v48 = vmul.f32 %v1747_v47, %v2353_v43 }
 0xf7c   :  { %v2231_v49 = vpop.eup %2230  ;;  %v1751_v50 = vadd.f32 1e-06, %v1749_v48 }
 0xf7d   :  { %v1753_v51 = vmul.f32 %v2231_v49, %v1750_v35  ;;  %vm1759_vm1 = vweird.f32 %v2231_v49 }
 0xf7e   :  { %2232 = vrsqrt.f32 %v1751_v50  ;;  %vm1760_vm3 = vmor %vm1758_vm2, %vm1759_vm1  ;;  %vm1768_vm6 = vweird.f32 %v1751_v50 }
 0xf7f   :  { %v1754_v52 = vmul.f32 %v2231_v49, %v1753_v51 }
 0xf81   :  { %v1755_v53 = vmul.f32 0.5, %v1754_v52 }
 0xf83   :  { %v1756_v54 = vsub.f32 1.5, %v1755_v53 }
 0xf84   :  { %v2233_v55 = vpop.eup %2232 }
 0xf85   :  { %v1757_v56 = vmul.f32 %v2231_v49, %v1756_v54  ;;  %v1763_v58 = vmul.f32 %v2233_v55, %v1751_v50  ;;  %vm1769_vm5 = vweird.f32 %v2233_v55 }
 0xf86   :  { %vm1770_vm7 = vmor %vm1768_vm6, %vm1769_vm5 }
 0xf87   :  { %v1761_v60 = vsel %vm1760_vm3, %v2231_v49, %v1757_v56  ;;  %v1764_v32 = vmul.f32 %v2233_v55, %v1763_v58 }
 0xf88   :  { %v1772_v61 = vmul.f32 %v1761_v60, %v1738_v36 }
 0xf89   :  { %v1765_v63 = vmul.f32 0.5, %v1764_v32 }
 0xf8a   :  { %v1775_v28 = vmul.f32 %v2137_v59, %v1772_v61  ;;  %v1929_v61 = vld [vmem:[#allocation2 + $0x240] sm:$0xff] }
 0xf8b   :  { %v1766_v0 = vsub.f32 1.5, %v1765_v63  ;;  %v1927_v63 = vld [vmem:[#allocation2 + $0x230] sm:$0xff] }
 0xf8c   :  { %v1778_v34 = vadd.f32 %v2138_v62, %v1775_v28 }
 0xf8d   :  { %v1767_v2 = vmul.f32 %v2233_v55, %v1766_v0 }
 0xf8e   :  { %2047 = vmatmul.msk.f32.vlgmr.msra.gmra.mxu1 %vm213_vm9, %v1778_v34 }
 0xf8f   :  { %v1771_v27 = vsel %vm1770_vm7, %v2233_v55, %v1767_v2 }
 0xf90   :  { %v1773_v30 = vmul.f32 %v1771_v27, %v1739_v40 }
 0xf92   :  { %v1776_v4 = vmul.f32 %v2137_v59, %v1773_v30 }
 0xf94   :  { %v1779_v5 = vadd.f32 %v2138_v62, %v1776_v4  ;;  %v1928_v62 = vld [vmem:[#allocation2 + $0x238] sm:$0xff] }
 0xf96   :  { %2048 = vmatmul.msk.f32.gmra.mxu1 %vm213_vm9, %v1779_v5 }
0x100b   :  { %v1809_v15 = vpop.f32.mrf.mxu1 }
0x100c   :  { %v1810_v16 = vadd.f32 %v2139_v57, %v1809_v15 }
0x100e   :  { %v1815_v17 = vmul.f32 %v1810_v16, %v1810_v16 }
0x1010   :  { %v1817_v18 = vmul.f32 %v1815_v17, %v1810_v16 }
0x1012   :  { %v1819_v26 = vmul.f32 0.044715, %v1817_v18  ;;  %v2143_v18 = vld [vmem:[#allocation2 + $0x250] ss:$0 sm:$0xff] }
0x1013   :  { %v1812_v19 = vpop.f32.mrf.mxu1 }
0x1014   :  { %v1821_v21 = vadd.f32 %v1819_v26, %v1810_v16  ;;  %v1813_v22 = vadd.f32 %v2139_v57, %v1812_v19  ;;  %v2142_v57 = vld [vmem:[#allocation2 + $0x228] ss:$0 sm:$0xff] }
0x1016   :  { %v1823_v23 = vmul.f32 0.7978846, %v1821_v21  ;;  %v1816_v25 = vmul.f32 %v1813_v22, %v1813_v22 }
0x1018   :  { %2234 = vtanh.f32 %v1823_v23  ;;  %v1818_v29 = vmul.f32 %v1816_v25, %v1813_v22 }
0x101a   :  { %v1820_v31 = vmul.f32 0.044715, %v1818_v29 }
0x101c   :  { %v1822_v36 = vadd.f32 %v1820_v31, %v1813_v22 }
0x101e   :  { %v2235_v6 = vpop.eup %2234  ;;  %v1824_v37 = vmul.f32 0.7978846, %v1822_v36 }
0x101f   :  { %v1827_v38 = vadd.f32 1.0, %v2235_v6 }
0x1020   :  { %2236 = vtanh.f32 %v1824_v37 }
0x1021   :  { %v1829_v39 = vmul.f32 0.5, %v1827_v38 }
0x1023   :  { %v1831_v40 = vmul.f32 %v1829_v39, %v1810_v16 }
0x1025   :  { %2049 = vmatmul.msk.f32.vlgmr.msra.gmra.mxu2 %vm179_vm8, %v1831_v40 }
0x1026   :  { %v2237_v10 = vpop.eup %2236 }
0x1027   :  { %v1828_v41 = vadd.f32 1.0, %v2237_v10 }
0x1029   :  { %v1830_v42 = vmul.f32 0.5, %v1828_v41 }
0x102b   :  { %v1832_v44 = vmul.f32 %v1830_v42, %v1813_v22 }
0x102d   :  { %2050 = vmatmul.msk.f32.gmra.mxu2 %vm179_vm8, %v1832_v44 }
0x10a8   :  { %v1866_v45 = vpop.f32.mrf.mxu2 }
0x10a9   :  { %v1867_v46 = vadd.f32 %v2140_v1, %v1866_v45 }
0x10ab   :  { %v1872_v48 = vadd.f32 %v1867_v46, %v2682_v20  ;;  %v1930_v20 = vld [vmem:[#allocation2 + $0x248] sm:$0xff] }
0x10ac   :  { %1951 = vmatpush.msra.mxu3 %v1930_v20 }
0x10ae   :  { %1952 = vmatpush.msra.mxu3 %v1929_v61 }
0x10b0   :  { %v1869_v3 = vpop.f32.mrf.mxu2  ;;  %1953 = vmatpush.msra.mxu3 %v1928_v62 }
0x10b1   :  { %v1870_v35 = vadd.f32 %v2140_v1, %v1869_v3 }
0x10b2   :  { %1954 = vmatpush.msra.mxu3 %v1927_v63 }
0x10b3   :  { %v1873_v47 = vadd.f32 %v1870_v35, %v2687_v24 }
0x10b5   :  { %v1878_v49 = vrot.slane %v1873_v47, 7 }
0x10b7   :  { %v1880_v50 = vsel %vm1879_vm10, %v1878_v49, %v1872_v48 }
0x10b8   :  { %v1883_v51 = vsel %vm1882_vm11, %v1880_v50, 0.0 }
0x10b9   :  { %1884 = vadd.xlane.f32.xlu1 %v1883_v51 }
0x112c   :  { %v1885_v52 = vpop.xlane.xlu1 %1884 }
0x112d   :  { %v1886_v53 = vmul.f32 %v1885_v52, %v2353_v43 }
0x112f   :  { %v1888_v54 = vrot.slane %v1886_v53, 1  ;;  %v1891_v55 = vsub.f32 %v1872_v48, %v1886_v53 }
0x1131   :  { %v1892_v56 = vsub.f32 %v1873_v47, %v1888_v54  ;;  %v1893_v59 = vmul.f32 %v1891_v55, %v1891_v55 }
0x1133   :  { %v1894_v58 = vmul.f32 %v1892_v56, %v1892_v56 }
0x1135   :  { %v1897_v60 = vrot.slane %v1894_v58, 7 }
0x1137   :  { %v1898_v24 = vsel %vm1879_vm10, %v1897_v60, %v1893_v59 }
0x1138   :  { %v1900_v32 = vsel %vm1882_vm11, %v1898_v24, 0.0 }
0x1139   :  { %1901 = vadd.xlane.f32.xlu0 %v1900_v32 }
0x11ac   :  { %v1902_v28 = vpop.xlane.xlu0 %1901 }
0x11ad   :  { %v1903_v0 = vmul.f32 %v1902_v28, %v2353_v43 }
0x11af   :  { %v1904_v34 = vadd.f32 1e-06, %v1903_v0 }
0x11b1   :  { %2238 = vrsqrt.f32 %v1904_v34  ;;  %vm1911_vm12 = vweird.f32 %v1904_v34 }
0x11b7   :  { %v2239_v2 = vpop.eup %2238 }
0x11b8   :  { %v1906_v27 = vmul.f32 %v2239_v2, %v1904_v34  ;;  %vm1912_vm8 = vweird.f32 %v2239_v2 }
0x11b9   :  { %vm1913_vm13 = vmor %vm1911_vm12, %vm1912_vm8 }
0x11ba   :  { %v1907_v30 = vmul.f32 %v2239_v2, %v1906_v27 }
0x11bc   :  { %v1908_v4 = vmul.f32 0.5, %v1907_v30 }
0x11be   :  { %v1909_v5 = vsub.f32 1.5, %v1908_v4 }
0x11c0   :  { %v1910_v33 = vmul.f32 %v2239_v2, %v1909_v5 }
0x11c2   :  { %v1914_v7 = vsel %vm1913_vm13, %v2239_v2, %v1910_v33 }
0x11c3   :  { %v1916_v9 = vrot.slane %v1914_v7, 1  ;;  %v1919_v11 = vmul.f32 %v1914_v7, %v1891_v55 }
0x11c5   :  { %v1920_v13 = vmul.f32 %v1916_v9, %v1892_v56  ;;  %v1922_v14 = vmul.f32 %v2141_v8, %v1919_v11 }
0x11c7   :  { %v1923_v12 = vmul.f32 %v2141_v8, %v1920_v13  ;;  %v1925_v15 = vadd.f32 %v2142_v57, %v1922_v14 }
0x11c9   :  { %v1926_v43 = vadd.f32 %v2142_v57, %v1923_v12 }
0x11cb   :  { %v1935_v16 = vrot.slane %v1926_v43, 7 }
0x11cd   :  { %v1936_v17 = vsel %vm1879_vm10, %v1935_v16, %v1925_v15 }
0x11ce   :  { %2051 = vmatmul.msk.f32.vlgmr.msra.gmra.mxu3 %vm213_vm9, %v1936_v17 }
0x1251   :  { %v1956_v26 = vpop.f32.mrf.mxu3 }
0x1252   :  { %v1957_v19 = vadd.f32 %v2143_v18, %v1956_v26 }
0x1254   :  { %1959 = vst [vmem:[#allocation5] sm:$0x3] %v1957_v19 }
0x1255   :  { %1970 = dma.vmem_to_hbm [thread:$0]  %s1966_s5, 32, %s1968_s8, [#allocation4]  }
0x1256   :  { %2290 = dma.done.wait [#allocation4], 32  }
0x1257   :  { %2291 = vsyncadd [#allocation4], 4294967264 }
0x1258   :  { %1975 = vsyncpa [#allocation3], 1 }
0x1259   :  { %1976 = vsyncpa [#allocation4], 1 }

</bundles_post_ra>
